<compile_context>
chip_gen: v5e
topology: v5e:2x2
jax: 0.10.0
libtpu: 0.0.40
codegen_flags: <defaults>
</compile_context>

<pallas_src>
import functools

import jax
import jax.numpy as jnp
from jax.experimental import pallas as pl
from jax.experimental.pallas import tpu as pltpu

# ----- "cfg" (GraphGym defaults) -------------------------------------------
STAGE_TYPE = "stack"      # 'stack' | 'stack_residual'
L2NORM = True

LANE = 128                # lane-dense feature padding
ROW_TILE_TARGET = 512     # preferred A row-tile when streaming (shrunk to fit VMEM)


def _round_up(x, m):
    return (x + m - 1) // m * m


# ----- Fused Pallas kernel ---------------------------------------------------
def _stack_kernel(a_ref, x0_ref, w_ref, b_ref, o_ref, xw_scr, *,
                  tile_rows, a_resident, residual, l2norm):
    layer = pl.program_id(0)
    rtile = pl.program_id(1)
    num_layers = pl.num_programs(0)
    row0 = pl.multiple_of(rtile * tile_rows, tile_rows)

    # ---- per-layer prologue (first row tile only): XW = X @ W_l, computed once ----
    # o_ref (the resident bf16 x store) is read directly for layers > 0; layer 0 reads
    # the bf16 input window, so there is no full-matrix copy and no per-layer cast.
    @pl.when(rtile == 0)
    def _prologue():
        @pl.when(layer == 0)
        def _():
            xw_scr[...] = jnp.dot(x0_ref[...], w_ref[0],
                                  preferred_element_type=jnp.float32
                                  ).astype(jnp.bfloat16)

        @pl.when(layer > 0)
        def _():
            xw_scr[...] = jnp.dot(o_ref[...], w_ref[0],
                                  preferred_element_type=jnp.float32
                                  ).astype(jnp.bfloat16)

    # ---- A_hat row tile @ XW on the MXU (bf16 in, f32 acc); bias + ReLU on VPU ----
    if a_resident:
        a_tile = a_ref[pl.ds(row0, tile_rows), :]     # A fully resident in VMEM
    else:
        a_tile = a_ref[...]                           # streamed (tile_rows, n_pad) window
    h = jnp.dot(a_tile, xw_scr[...], preferred_element_type=jnp.float32)
    h = jnp.maximum(h + b_ref[0], 0.0)                # (tile_rows, d_pad) + (1, d_pad)

    def _write(hv):
        # intermediate layers: store into the resident x (= output window), bf16
        @pl.when(layer < num_layers - 1)
        def _():
            o_ref[pl.ds(row0, tile_rows), :] = hv.astype(o_ref.dtype)

        # last layer: fused L2 normalization (rsqrt -> EUP), lane-dense store
        @pl.when(layer == num_layers - 1)
        def _():
            if l2norm:
                ssq = jnp.sum(hv * hv, axis=-1, keepdims=True)
                # F.normalize(p=2, dim=-1, eps=1e-12): x / max(||x||, eps)
                inv = jax.lax.rsqrt(jnp.maximum(ssq, 1e-24))
                o_ref[pl.ds(row0, tile_rows), :] = (hv * inv).astype(o_ref.dtype)
            else:
                o_ref[pl.ds(row0, tile_rows), :] = hv.astype(o_ref.dtype)

    if residual:                                      # 'stack_residual': x_prev + layer(x_prev)
        @pl.when(layer == 0)
        def _():
            _write(h + x0_ref[pl.ds(row0, tile_rows), :].astype(jnp.float32))

        @pl.when(layer > 0)
        def _():
            _write(h + o_ref[pl.ds(row0, tile_rows), :].astype(jnp.float32))
    else:
        _write(h)


@functools.partial(jax.jit, static_argnames=("residual", "l2norm", "tile_rows",
                                              "a_resident", "single_buffer"))
def _fused_stack(a_pad, x_pad, w_stack, b_stack, *, residual, l2norm,
                 tile_rows, a_resident, single_buffer):
    n_pad, d_pad = x_pad.shape
    num_layers = w_stack.shape[0]
    num_row_tiles = n_pad // tile_rows

    kernel = functools.partial(_stack_kernel, tile_rows=tile_rows,
                               a_resident=a_resident, residual=residual,
                               l2norm=l2norm)

    def _resident_spec(shape):
        # Constant-index window: resident for the whole kernel.  Double buffering a
        # never-changing window buys no overlap, so single-buffer it when supported.
        if single_buffer:
            return pl.BlockSpec(shape, lambda l, r: (0, 0),
                                pipeline_mode=pl.Buffered(1))
        return pl.BlockSpec(shape, lambda l, r: (0, 0))

    if a_resident:
        a_spec = _resident_spec((n_pad, n_pad))
        a_bytes = n_pad * n_pad * 2 * (1 if single_buffer else 2)
    else:
        a_spec = pl.BlockSpec((tile_rows, n_pad), lambda l, r: (r, 0))
        a_bytes = 2 * tile_rows * n_pad * 2          # double-buffered bf16 row tiles

    # Explicit scoped-VMEM budget computed from the actual buffers (+ headroom).
    copies = 1 if single_buffer else 2
    need = (a_bytes
            + copies * 2 * n_pad * d_pad * 2          # x0 + out windows (bf16)
            + n_pad * d_pad * 2                       # xw_scr (bf16)
            + 2 * (d_pad * d_pad * 2 + d_pad * 4))    # W + b (double-buffered)
    vmem_limit = max(int(need * 1.3) + (2 << 20), 32 << 20)

    return pl.pallas_call(
        kernel,
        out_shape=jax.ShapeDtypeStruct((n_pad, d_pad), jnp.bfloat16),
        grid_spec=pltpu.PrefetchScalarGridSpec(
            num_scalar_prefetch=0,
            grid=(num_layers, num_row_tiles),
            in_specs=[
                a_spec,
                # Initial node features (bf16); only read during layer 0.
                _resident_spec((n_pad, d_pad)),
                # Per-layer weights / bias streamed along the layer grid axis
                # (double-buffered -> next layer's W prefetched during this layer).
                pl.BlockSpec((1, d_pad, d_pad), lambda l, r: (l, 0, 0)),
                pl.BlockSpec((1, 1, d_pad), lambda l, r: (l, 0, 0)),
            ],
            # Output doubles as the resident bf16 x store across layers.
            out_specs=_resident_spec((n_pad, d_pad)),
            scratch_shapes=[
                pltpu.VMEM((n_pad, d_pad), jnp.bfloat16),   # XW of the current layer
            ],
        ),
        # Layers are sequential; row tiles share the per-layer XW scratch.
        compiler_params=pltpu.CompilerParams(
            dimension_semantics=("arbitrary", "arbitrary"),
            vmem_limit_bytes=vmem_limit),
    )(a_pad, x_pad, w_stack, b_stack)


# ----- Wrapper: pad to MXU/lane-friendly shapes, pick tiling, pack params ----
def gnn_stack_stage(a_hat, x, params, *, stage_type=STAGE_TYPE, l2norm=L2NORM,
                    row_tile=None, a_resident=None):
    """Mirrors GNNStackStage.forward on a dense normalized-adjacency graph batch.

    params: list of (W [d_in, d_out] f32, b [1, d_out] f32) per layer.
    """
    assert stage_type in ("stack", "stack_residual")
    n, d_in = x.shape
    num_layers = len(params)
    d_out = params[-1][0].shape[1]

    dims = [d_in] + [w.shape[0] for w, _ in params] + [w.shape[1] for w, _ in params]
    d_pad = _round_up(max(dims), LANE)               # lane-dense feature width
    n128 = _round_up(max(n, 1), 128)

    # ---- choose A residency / row-tile size from the per-generation VMEM budget ----
    try:
        vmem_cap = getattr(pltpu.get_tpu_info(), "vmem_capacity_bytes", None) or (64 << 20)
    except Exception:
        vmem_cap = 64 << 20                          # conservative (v7x) fallback
    budget = int(vmem_cap * 0.7)
    fixed = 3 * n128 * d_pad * 2 + 2 * (d_pad * d_pad * 2 + d_pad * 4)
    if a_resident is None:
        a_resident = (fixed + n128 * n128 * 2) <= budget
    if row_tile is None:
        if a_resident:
            row_tile = ROW_TILE_TARGET
        else:
            row_tile = 128
            for t in (ROW_TILE_TARGET, 256, 128):
                if fixed + 2 * t * n128 * 2 <= budget:
                    row_tile = t
                    break
    tile_rows = min(row_tile, n128)
    n_pad = _round_up(n, tile_rows)

    # Zero-padding keeps the math exact: padded feature columns stay zero through
    # every layer (padded W rows/cols and bias are zero), padded node rows never
    # influence real rows (padded A_hat columns are zero).
    a_pad = jnp.zeros((n_pad, n_pad), jnp.bfloat16).at[:n, :n].set(
        a_hat.astype(jnp.bfloat16))
    x_pad = jnp.zeros((n_pad, d_pad), jnp.bfloat16).at[:n, :d_in].set(
        x.astype(jnp.bfloat16))

    w_stack = jnp.zeros((num_layers, d_pad, d_pad), jnp.bfloat16)
    b_stack = jnp.zeros((num_layers, 1, d_pad), jnp.float32)
    for i, (w, b) in enumerate(params):
        w_stack = w_stack.at[i, :w.shape[0], :w.shape[1]].set(w.astype(jnp.bfloat16))
        b_stack = b_stack.at[i, :, :b.shape[1]].set(b.astype(jnp.float32))

    kwargs = dict(residual=(stage_type == "stack_residual"), l2norm=l2norm,
                  tile_rows=int(tile_rows), a_resident=bool(a_resident))
    try:
        out = _fused_stack(a_pad, x_pad, w_stack, b_stack, single_buffer=True, **kwargs)
        jax.block_until_ready(out)
    except Exception:
        # pipeline_mode=pl.Buffered(1) unsupported on this jax/libtpu: fall back to the
        # default double-buffered constant-index windows (identical results, more VMEM).
        out = _fused_stack(a_pad, x_pad, w_stack, b_stack, single_buffer=False, **kwargs)
    return out[:n, :d_out].astype(jnp.float32)


# ----- Deterministic parameter / input construction --------------------------
def make_params(key, dim_in, dim_out, num_layers):
    params = []
    d_in = dim_in
    for _ in range(num_layers):
        kw, kb, key = jax.random.split(key, 3)
        scale = 1.0 / jnp.sqrt(jnp.float32(d_in))
        w = jax.random.uniform(kw, (d_in, dim_out), jnp.float32, -scale, scale)
        b = jax.random.uniform(kb, (1, dim_out), jnp.float32, -scale, scale)
        params.append((w, b))
        d_in = dim_out
    return params


def make_graph(key, n, p=0.3):
    ka, _ = jax.random.split(key)
    a = (jax.random.uniform(ka, (n, n)) < p).astype(jnp.float32)
    a = jnp.maximum(a, a.T)                                  # symmetrize
    a = jnp.maximum(a, jnp.eye(n, dtype=jnp.float32))        # self loops
    deg = jnp.sum(a, axis=-1)
    d_inv_sqrt = 1.0 / jnp.sqrt(deg)
    a_hat = a * d_inv_sqrt[:, None] * d_inv_sqrt[None, :]    # D^-1/2 (A+I) D^-1/2
    return a_hat


def _reference(a_hat, x, params, stage_type=STAGE_TYPE, l2norm=L2NORM):
    x = x.astype(jnp.float32)
    for (w, b2d) in params:
        x_prev = x
        x = jnp.maximum(a_hat @ (x @ w) + b2d, 0.0)
        if stage_type == "stack_residual":
            x = x_prev + x
    if l2norm:
        nrm = jnp.sqrt(jnp.sum(x * x, axis=-1, keepdims=True))
        x = x / jnp.maximum(nrm, 1e-12)
    return x


if __name__ == "__main__":
    key = jax.random.PRNGKey(0)
    k1, k2, k3, k4, k5, k6 = jax.random.split(key, 6)

    # bf16 MXU inputs with f32 accumulation -> compare against the pure-f32 reference
    # with a bf16-appropriate tolerance (outputs are L2-normalized, |x| <= 1).
    TOL = 5e-2

    # --- test 1: default 'stack' config, tiny graph (A fully VMEM-resident path) ---
    N, DIM_IN, DIM_OUT, NUM_LAYERS = 16, 16, 32, 2
    a_hat = make_graph(k1, N)
    x = jax.random.normal(k2, (N, DIM_IN), jnp.float32)
    params = make_params(k3, DIM_IN, DIM_OUT, NUM_LAYERS)
    out = jax.block_until_ready(gnn_stack_stage(a_hat, x, params))
    ref = _reference(a_hat, x, params)
    assert out.shape == (N, DIM_OUT)
    err = float(jnp.max(jnp.abs(out - ref)))
    assert jnp.allclose(out, ref, atol=TOL, rtol=TOL), f"stack max abs err {err}"

    # --- test 2: streamed-A row tiles (multi-tile, multi-layer) --------------------
    N2, DI2, DO2, L2 = 200, 24, 48, 3
    a2 = make_graph(k4, N2)
    x2 = jax.random.normal(k5, (N2, DI2), jnp.float32)
    p2 = make_params(k6, DI2, DO2, L2)
    out2 = jax.block_until_ready(
        gnn_stack_stage(a2, x2, p2, a_resident=False, row_tile=128))
    ref2 = _reference(a2, x2, p2)
    assert out2.shape == (N2, DO2)
    err2 = float(jnp.max(jnp.abs(out2 - ref2)))
    assert jnp.allclose(out2, ref2, atol=TOL, rtol=TOL), f"streamed max abs err {err2}"

    # --- test 3: 'stack_residual' (d_in == d_out) -----------------------------------
    kk1, kk2, kk3 = jax.random.split(jax.random.PRNGKey(1), 3)
    N3, D3, L3 = 64, 32, 2
    a3 = make_graph(kk1, N3)
    x3 = jax.random.normal(kk2, (N3, D3), jnp.float32)
    p3 = make_params(kk3, D3, D3, L3)
    out3 = jax.block_until_ready(
        gnn_stack_stage(a3, x3, p3, stage_type="stack_residual"))
    ref3 = _reference(a3, x3, p3, stage_type="stack_residual")
    err3 = float(jnp.max(jnp.abs(out3 - ref3)))
    assert jnp.allclose(out3, ref3, atol=TOL, rtol=TOL), f"residual max abs err {err3}"

    print("KERNEL_OK")
</pallas_src>

<mosaic_0001>
module attributes {stable_mosaic.version = 11 : i64} {
  func.func @_stack_kernel(%arg0: i32, %arg1: i32, %arg2: memref<128x128xbf16, #tpu.memory_space<vmem>>, %arg3: memref<128x128xbf16, #tpu.memory_space<vmem>>, %arg4: memref<1x128x128xbf16, #tpu.memory_space<vmem>>, %arg5: memref<1x1x128xf32, #tpu.memory_space<vmem>>, %arg6: memref<128x128xbf16, #tpu.memory_space<vmem>>, %arg7: memref<128x128xbf16, #tpu.memory_space<vmem>>) attributes {dimension_semantics = [#tpu.dimension_semantics<arbitrary>, #tpu.dimension_semantics<arbitrary>], iteration_bounds = array<i64: 2, 1>, scalar_prefetch = 0 : i64, scratch_operands = 1 : i64, tpu.core_type = #tpu.core_type<tc>, window_params = [{pipeline_mode = #tpu.pipeline_mode<synchronous>, transform_indices = @transform_0, window_bounds = array<i64: 128, 128>}, {pipeline_mode = #tpu.pipeline_mode<synchronous>, transform_indices = @transform_1, window_bounds = array<i64: 128, 128>}, {transform_indices = @transform_2, window_bounds = array<i64: 1, 128, 128>}, {transform_indices = @transform_3, window_bounds = array<i64: 1, 1, 128>}, {pipeline_mode = #tpu.pipeline_mode<synchronous>, transform_indices = @transform_4, window_bounds = array<i64: 128, 128>}]} {
    %c128_i32 = arith.constant 128 : i32
    %0 = arith.muli %arg1, %c128_i32 : i32
    %1 = tpu.assume_multiple %0, 128 : i32
    %c0_i32 = arith.constant 0 : i32
    %2 = arith.cmpi eq, %arg1, %c0_i32 : i32
    %3 = arith.extui %2 : i1 to i32
    %c0_i32_0 = arith.constant 0 : i32
    %4 = arith.cmpi ne, %3, %c0_i32_0 : i32
    scf.if %4 {
      %c0_i32_10 = arith.constant 0 : i32
      %21 = arith.cmpi eq, %arg0, %c0_i32_10 : i32
      %22 = arith.extui %21 : i1 to i32
      %c0_i32_11 = arith.constant 0 : i32
      %23 = arith.cmpi ne, %22, %c0_i32_11 : i32
      scf.if %23 {
        %c0_14 = arith.constant 0 : index
        %c0_15 = arith.constant 0 : index
        %27 = vector.load %arg3[%c0_14, %c0_15] : memref<128x128xbf16, #tpu.memory_space<vmem>>, vector<128x128xbf16>
        %c0_16 = arith.constant 0 : index
        %c0_17 = arith.constant 0 : index
        %c0_18 = arith.constant 0 : index
        %28 = vector.load %arg4[%c0_16, %c0_17, %c0_18] : memref<1x128x128xbf16, #tpu.memory_space<vmem>>, vector<1x128x128xbf16>
        %29 = vector.shape_cast %28 : vector<1x128x128xbf16> to vector<128x128xbf16>
        %cst_19 = arith.constant dense<0.000000e+00> : vector<128x128xf32>
        %30 = tpu.matmul %27, %29, %cst_19 {dimension_numbers = #tpu.dot_dimension_numbers<[1], [0], [0], [1], [0, 0, 1, 1], [], []>} : vector<128x128xbf16>, vector<128x128xbf16>, vector<128x128xf32> -> vector<128x128xf32>
        %31 = arith.truncf %30 : vector<128x128xf32> to vector<128x128xbf16>
        %c0_20 = arith.constant 0 : index
        %c0_21 = arith.constant 0 : index
        %32 = vector.load %arg7[%c0_20, %c0_21] : memref<128x128xbf16, #tpu.memory_space<vmem>>, vector<128x128xbf16>
        tpu.vector_store %arg7[%c0_20, %c0_21], %31 {strides = array<i32>} : memref<128x128xbf16, #tpu.memory_space<vmem>>, vector<128x128xbf16>,
      } else {
      }
      %c0_i32_12 = arith.constant 0 : i32
      %24 = arith.cmpi sgt, %arg0, %c0_i32_12 : i32
      %25 = arith.extui %24 : i1 to i32
      %c0_i32_13 = arith.constant 0 : i32
      %26 = arith.cmpi ne, %25, %c0_i32_13 : i32
      scf.if %26 {
        %c0_14 = arith.constant 0 : index
        %c0_15 = arith.constant 0 : index
        %27 = vector.load %arg6[%c0_14, %c0_15] : memref<128x128xbf16, #tpu.memory_space<vmem>>, vector<128x128xbf16>
        %c0_16 = arith.constant 0 : index
        %c0_17 = arith.constant 0 : index
        %c0_18 = arith.constant 0 : index
        %28 = vector.load %arg4[%c0_16, %c0_17, %c0_18] : memref<1x128x128xbf16, #tpu.memory_space<vmem>>, vector<1x128x128xbf16>
        %29 = vector.shape_cast %28 : vector<1x128x128xbf16> to vector<128x128xbf16>
        %cst_19 = arith.constant dense<0.000000e+00> : vector<128x128xf32>
        %30 = tpu.matmul %27, %29, %cst_19 {dimension_numbers = #tpu.dot_dimension_numbers<[1], [0], [0], [1], [0, 0, 1, 1], [], []>} : vector<128x128xbf16>, vector<128x128xbf16>, vector<128x128xf32> -> vector<128x128xf32>
        %31 = arith.truncf %30 : vector<128x128xf32> to vector<128x128xbf16>
        %c0_20 = arith.constant 0 : index
        %c0_21 = arith.constant 0 : index
        %32 = vector.load %arg7[%c0_20, %c0_21] : memref<128x128xbf16, #tpu.memory_space<vmem>>, vector<128x128xbf16>
        tpu.vector_store %arg7[%c0_20, %c0_21], %31 {strides = array<i32>} : memref<128x128xbf16, #tpu.memory_space<vmem>>, vector<128x128xbf16>,
      } else {
      }
    } else {
    }
    %5 = arith.index_cast %1 : i32 to index
    %c0 = arith.constant 0 : index
    %6 = vector.load %arg2[%5, %c0] : memref<128x128xbf16, #tpu.memory_space<vmem>>, vector<128x128xbf16>
    %c0_1 = arith.constant 0 : index
    %c0_2 = arith.constant 0 : index
    %7 = vector.load %arg7[%c0_1, %c0_2] : memref<128x128xbf16, #tpu.memory_space<vmem>>, vector<128x128xbf16>
    %cst = arith.constant dense<0.000000e+00> : vector<128x128xf32>
    %8 = tpu.matmul %6, %7, %cst {dimension_numbers = #tpu.dot_dimension_numbers<[1], [0], [0], [1], [0, 0, 1, 1], [], []>} : vector<128x128xbf16>, vector<128x128xbf16>, vector<128x128xf32> -> vector<128x128xf32>
    %c0_3 = arith.constant 0 : index
    %c0_4 = arith.constant 0 : index
    %c0_5 = arith.constant 0 : index
    %9 = vector.load %arg5[%c0_3, %c0_4, %c0_5] : memref<1x1x128xf32, #tpu.memory_space<vmem>>, vector<1x1x128xf32>
    %10 = vector.shape_cast %9 : vector<1x1x128xf32> to vector<1x128xf32>
    %11 = vector.broadcast %10 : vector<1x128xf32> to vector<128x128xf32>
    %12 = arith.addf %8, %11 : vector<128x128xf32>
    %cst_6 = arith.constant 0.000000e+00 : f32
    %13 = vector.broadcast %cst_6 : f32 to vector<128x128xf32>
    %14 = arith.maximumf %12, %13 : vector<128x128xf32>
    %c1_i32 = arith.constant 1 : i32
    %15 = arith.cmpi slt, %arg0, %c1_i32 : i32
    %16 = arith.extui %15 : i1 to i32
    %c0_i32_7 = arith.constant 0 : i32
    %17 = arith.cmpi ne, %16, %c0_i32_7 : i32
    scf.if %17 {
      %21 = arith.truncf %14 : vector<128x128xf32> to vector<128x128xbf16>
      %22 = arith.index_cast %1 : i32 to index
      %c0_10 = arith.constant 0 : index
      %23 = vector.load %arg6[%22, %c0_10] : memref<128x128xbf16, #tpu.memory_space<vmem>>, vector<128x128xbf16>
      tpu.vector_store %arg6[%22, %c0_10], %21 {strides = array<i32>} : memref<128x128xbf16, #tpu.memory_space<vmem>>, vector<128x128xbf16>,
    } else {
    }
    %c1_i32_8 = arith.constant 1 : i32
    %18 = arith.cmpi eq, %arg0, %c1_i32_8 : i32
    %19 = arith.extui %18 : i1 to i32
    %c0_i32_9 = arith.constant 0 : i32
    %20 = arith.cmpi ne, %19, %c0_i32_9 : i32
    scf.if %20 {
      %21 = arith.mulf %14, %14 : vector<128x128xf32>
      %cst_10 = arith.constant dense<0.000000e+00> : vector<128xf32>
      %22 = vector.multi_reduction <add>, %21, %cst_10 [1] : vector<128x128xf32> to vector<128xf32>
      %23 = vector.shape_cast %22 : vector<128xf32> to vector<128x1xf32>
      %cst_11 = arith.constant 1.000000e-24 : f32
      %24 = vector.broadcast %cst_11 : f32 to vector<128x1xf32>
      %25 = arith.maximumf %23, %24 : vector<128x1xf32>
      %26 = math.rsqrt %25 : vector<128x1xf32>
      %27 = vector.broadcast %26 : vector<128x1xf32> to vector<128x128xf32>
      %28 = arith.mulf %14, %27 : vector<128x128xf32>
      %29 = arith.truncf %28 : vector<128x128xf32> to vector<128x128xbf16>
      %30 = arith.index_cast %1 : i32 to index
      %c0_12 = arith.constant 0 : index
      %31 = vector.load %arg6[%30, %c0_12] : memref<128x128xbf16, #tpu.memory_space<vmem>>, vector<128x128xbf16>
      tpu.vector_store %arg6[%30, %c0_12], %29 {strides = array<i32>} : memref<128x128xbf16, #tpu.memory_space<vmem>>, vector<128x128xbf16>,
    } else {
    }
    return
  }
  func.func @transform_0(%arg0: i32, %arg1: i32) -> (i32, i32) {
    %c0_i32 = arith.constant 0 : i32
    %c0_i32_0 = arith.constant 0 : i32
    %c0_i32_1 = arith.constant 0 : i32
    return %c0_i32, %c0_i32_0 : i32, i32
  }
  func.func @transform_1(%arg0: i32, %arg1: i32) -> (i32, i32) {
    %c0_i32 = arith.constant 0 : i32
    %c0_i32_0 = arith.constant 0 : i32
    %c0_i32_1 = arith.constant 0 : i32
    return %c0_i32, %c0_i32_0 : i32, i32
  }
  func.func @transform_2(%arg0: i32, %arg1: i32) -> (i32, i32, i32) {
    %c0_i32 = arith.constant 0 : i32
    %c0_i32_0 = arith.constant 0 : i32
    %c0_i32_1 = arith.constant 0 : i32
    return %arg0, %c0_i32, %c0_i32_0 : i32, i32, i32
  }
  func.func @transform_3(%arg0: i32, %arg1: i32) -> (i32, i32, i32) {
    %c0_i32 = arith.constant 0 : i32
    %c0_i32_0 = arith.constant 0 : i32
    %c0_i32_1 = arith.constant 0 : i32
    return %arg0, %c0_i32, %c0_i32_0 : i32, i32, i32
  }
  func.func @transform_4(%arg0: i32, %arg1: i32) -> (i32, i32) {
    %c0_i32 = arith.constant 0 : i32
    %c0_i32_0 = arith.constant 0 : i32
    %c0_i32_1 = arith.constant 0 : i32
    return %c0_i32, %c0_i32_0 : i32, i32
  }
}

module attributes {stable_mosaic.version = 11 : i64} {
  func.func @_stack_kernel(%arg0: i32, %arg1: i32, %arg2: memref<128x128xbf16, #tpu.memory_space<vmem>>, %arg3: memref<128x128xbf16, #tpu.memory_space<vmem>>, %arg4: memref<1x128x128xbf16, #tpu.memory_space<vmem>>, %arg5: memref<1x1x128xf32, #tpu.memory_space<vmem>>, %arg6: memref<128x128xbf16, #tpu.memory_space<vmem>>, %arg7: memref<128x128xbf16, #tpu.memory_space<vmem>>) attributes {dimension_semantics = [#tpu.dimension_semantics<arbitrary>, #tpu.dimension_semantics<arbitrary>], iteration_bounds = array<i64: 2, 1>, scalar_prefetch = 0 : i64, scratch_operands = 1 : i64, tpu.core_type = #tpu.core_type<tc>, window_params = [{pipeline_mode = #tpu.pipeline_mode<synchronous>, transform_indices = @transform_0, window_bounds = array<i64: 128, 128>}, {pipeline_mode = #tpu.pipeline_mode<synchronous>, transform_indices = @transform_1, window_bounds = array<i64: 128, 128>}, {transform_indices = @transform_2, window_bounds = array<i64: 1, 128, 128>}, {transform_indices = @transform_3, window_bounds = array<i64: 1, 1, 128>}, {pipeline_mode = #tpu.pipeline_mode<synchronous>, transform_indices = @transform_4, window_bounds = array<i64: 128, 128>}]} {
    %c128_i32 = arith.constant 128 : i32
    %0 = arith.muli %arg1, %c128_i32 : i32
    %1 = tpu.assume_multiple %0, 128 : i32
    %c0_i32 = arith.constant 0 : i32
    %2 = arith.cmpi eq, %arg1, %c0_i32 : i32
    %3 = arith.extui %2 : i1 to i32
    %c0_i32_0 = arith.constant 0 : i32
    %4 = arith.cmpi ne, %3, %c0_i32_0 : i32
    scf.if %4 {
      %c0_i32_10 = arith.constant 0 : i32
      %21 = arith.cmpi eq, %arg0, %c0_i32_10 : i32
      %22 = arith.extui %21 : i1 to i32
      %c0_i32_11 = arith.constant 0 : i32
      %23 = arith.cmpi ne, %22, %c0_i32_11 : i32
      scf.if %23 {
        %c0_14 = arith.constant 0 : index
        %c0_15 = arith.constant 0 : index
        %27 = vector.load %arg3[%c0_14, %c0_15] : memref<128x128xbf16, #tpu.memory_space<vmem>>, vector<128x128xbf16>
        %c0_16 = arith.constant 0 : index
        %c0_17 = arith.constant 0 : index
        %c0_18 = arith.constant 0 : index
        %28 = vector.load %arg4[%c0_16, %c0_17, %c0_18] : memref<1x128x128xbf16, #tpu.memory_space<vmem>>, vector<1x128x128xbf16>
        %29 = vector.shape_cast %28 : vector<1x128x128xbf16> to vector<128x128xbf16>
        %cst_19 = arith.constant dense<0.000000e+00> : vector<128x128xf32>
        %30 = tpu.matmul %27, %29, %cst_19 {dimension_numbers = #tpu.dot_dimension_numbers<[1], [0], [0], [1], [0, 0, 1, 1], [], []>} : vector<128x128xbf16>, vector<128x128xbf16>, vector<128x128xf32> -> vector<128x128xf32>
        %31 = arith.truncf %30 : vector<128x128xf32> to vector<128x128xbf16>
        %c0_20 = arith.constant 0 : index
        %c0_21 = arith.constant 0 : index
        %32 = vector.load %arg7[%c0_20, %c0_21] : memref<128x128xbf16, #tpu.memory_space<vmem>>, vector<128x128xbf16>
        tpu.vector_store %arg7[%c0_20, %c0_21], %31 {strides = array<i32>} : memref<128x128xbf16, #tpu.memory_space<vmem>>, vector<128x128xbf16>,
      } else {
      }
      %c0_i32_12 = arith.constant 0 : i32
      %24 = arith.cmpi sgt, %arg0, %c0_i32_12 : i32
      %25 = arith.extui %24 : i1 to i32
      %c0_i32_13 = arith.constant 0 : i32
      %26 = arith.cmpi ne, %25, %c0_i32_13 : i32
      scf.if %26 {
        %c0_14 = arith.constant 0 : index
        %c0_15 = arith.constant 0 : index
        %27 = vector.load %arg6[%c0_14, %c0_15] : memref<128x128xbf16, #tpu.memory_space<vmem>>, vector<128x128xbf16>
        %c0_16 = arith.constant 0 : index
        %c0_17 = arith.constant 0 : index
        %c0_18 = arith.constant 0 : index
        %28 = vector.load %arg4[%c0_16, %c0_17, %c0_18] : memref<1x128x128xbf16, #tpu.memory_space<vmem>>, vector<1x128x128xbf16>
        %29 = vector.shape_cast %28 : vector<1x128x128xbf16> to vector<128x128xbf16>
        %cst_19 = arith.constant dense<0.000000e+00> : vector<128x128xf32>
        %30 = tpu.matmul %27, %29, %cst_19 {dimension_numbers = #tpu.dot_dimension_numbers<[1], [0], [0], [1], [0, 0, 1, 1], [], []>} : vector<128x128xbf16>, vector<128x128xbf16>, vector<128x128xf32> -> vector<128x128xf32>
        %31 = arith.truncf %30 : vector<128x128xf32> to vector<128x128xbf16>
        %c0_20 = arith.constant 0 : index
        %c0_21 = arith.constant 0 : index
        %32 = vector.load %arg7[%c0_20, %c0_21] : memref<128x128xbf16, #tpu.memory_space<vmem>>, vector<128x128xbf16>
        tpu.vector_store %arg7[%c0_20, %c0_21], %31 {strides = array<i32>} : memref<128x128xbf16, #tpu.memory_space<vmem>>, vector<128x128xbf16>,
      } else {
      }
    } else {
    }
    %5 = arith.index_cast %1 : i32 to index
    %c0 = arith.constant 0 : index
    %6 = vector.load %arg2[%5, %c0] : memref<128x128xbf16, #tpu.memory_space<vmem>>, vector<128x128xbf16>
    %c0_1 = arith.constant 0 : index
    %c0_2 = arith.constant 0 : index
    %7 = vector.load %arg7[%c0_1, %c0_2] : memref<128x128xbf16, #tpu.memory_space<vmem>>, vector<128x128xbf16>
    %cst = arith.constant dense<0.000000e+00> : vector<128x128xf32>
    %8 = tpu.matmul %6, %7, %cst {dimension_numbers = #tpu.dot_dimension_numbers<[1], [0], [0], [1], [0, 0, 1, 1], [], []>} : vector<128x128xbf16>, vector<128x128xbf16>, vector<128x128xf32> -> vector<128x128xf32>
    %c0_3 = arith.constant 0 : index
    %c0_4 = arith.constant 0 : index
    %c0_5 = arith.constant 0 : index
    %9 = vector.load %arg5[%c0_3, %c0_4, %c0_5] : memref<1x1x128xf32, #tpu.memory_space<vmem>>, vector<1x1x128xf32>
    %10 = vector.shape_cast %9 : vector<1x1x128xf32> to vector<1x128xf32>
    %11 = vector.broadcast %10 : vector<1x128xf32> to vector<128x128xf32>
    %12 = arith.addf %8, %11 : vector<128x128xf32>
    %cst_6 = arith.constant 0.000000e+00 : f32
    %13 = vector.broadcast %cst_6 : f32 to vector<128x128xf32>
    %14 = arith.maximumf %12, %13 : vector<128x128xf32>
    %c1_i32 = arith.constant 1 : i32
    %15 = arith.cmpi slt, %arg0, %c1_i32 : i32
    %16 = arith.extui %15 : i1 to i32
    %c0_i32_7 = arith.constant 0 : i32
    %17 = arith.cmpi ne, %16, %c0_i32_7 : i32
    scf.if %17 {
      %21 = arith.truncf %14 : vector<128x128xf32> to vector<128x128xbf16>
      %22 = arith.index_cast %1 : i32 to index
      %c0_10 = arith.constant 0 : index
      %23 = vector.load %arg6[%22, %c0_10] : memref<128x128xbf16, #tpu.memory_space<vmem>>, vector<128x128xbf16>
      tpu.vector_store %arg6[%22, %c0_10], %21 {strides = array<i32>} : memref<128x128xbf16, #tpu.memory_space<vmem>>, vector<128x128xbf16>,
    } else {
    }
    %c1_i32_8 = arith.constant 1 : i32
    %18 = arith.cmpi eq, %arg0, %c1_i32_8 : i32
    %19 = arith.extui %18 : i1 to i32
    %c0_i32_9 = arith.constant 0 : i32
    %20 = arith.cmpi ne, %19, %c0_i32_9 : i32
    scf.if %20 {
      %21 = arith.mulf %14, %14 : vector<128x128xf32>
      %cst_10 = arith.constant dense<0.000000e+00> : vector<128xf32>
      %22 = vector.multi_reduction <add>, %21, %cst_10 [1] : vector<128x128xf32> to vector<128xf32>
      %23 = vector.shape_cast %22 : vector<128xf32> to vector<128x1xf32>
      %cst_11 = arith.constant 1.000000e-24 : f32
      %24 = vector.broadcast %cst_11 : f32 to vector<128x1xf32>
      %25 = arith.maximumf %23, %24 : vector<128x1xf32>
      %26 = math.rsqrt %25 : vector<128x1xf32>
      %27 = vector.broadcast %26 : vector<128x1xf32> to vector<128x128xf32>
      %28 = arith.mulf %14, %27 : vector<128x128xf32>
      %29 = arith.truncf %28 : vector<128x128xf32> to vector<128x128xbf16>
      %30 = arith.index_cast %1 : i32 to index
      %c0_12 = arith.constant 0 : index
      %31 = vector.load %arg6[%30, %c0_12] : memref<128x128xbf16, #tpu.memory_space<vmem>>, vector<128x128xbf16>
      tpu.vector_store %arg6[%30, %c0_12], %29 {strides = array<i32>} : memref<128x128xbf16, #tpu.memory_space<vmem>>, vector<128x128xbf16>,
    } else {
    }
    return
  }
  func.func @transform_0(%arg0: i32, %arg1: i32) -> (i32, i32) {
    %c0_i32 = arith.constant 0 : i32
    %c0_i32_0 = arith.constant 0 : i32
    %c0_i32_1 = arith.constant 0 : i32
    return %c0_i32, %c0_i32_0 : i32, i32
  }
  func.func @transform_1(%arg0: i32, %arg1: i32) -> (i32, i32) {
    %c0_i32 = arith.constant 0 : i32
    %c0_i32_0 = arith.constant 0 : i32
    %c0_i32_1 = arith.constant 0 : i32
    return %c0_i32, %c0_i32_0 : i32, i32
  }
  func.func @transform_2(%arg0: i32, %arg1: i32) -> (i32, i32, i32) {
    %c0_i32 = arith.constant 0 : i32
    %c0_i32_0 = arith.constant 0 : i32
    %c0_i32_1 = arith.constant 0 : i32
    return %arg0, %c0_i32, %c0_i32_0 : i32, i32, i32
  }
  func.func @transform_3(%arg0: i32, %arg1: i32) -> (i32, i32, i32) {
    %c0_i32 = arith.constant 0 : i32
    %c0_i32_0 = arith.constant 0 : i32
    %c0_i32_1 = arith.constant 0 : i32
    return %arg0, %c0_i32, %c0_i32_0 : i32, i32, i32
  }
  func.func @transform_4(%arg0: i32, %arg1: i32) -> (i32, i32) {
    %c0_i32 = arith.constant 0 : i32
    %c0_i32_0 = arith.constant 0 : i32
    %c0_i32_1 = arith.constant 0 : i32
    return %c0_i32, %c0_i32_0 : i32, i32
  }
}

</mosaic_0001>

<bundles_post_ra>
// kernel: _fused_stack.1
= control target key start
LH: loop header
LB: loop body
LE: loop exit
PB: predicated region body
PF: predicated region fallthrough
CT: control target
= control target key end

     0   :  { %9 = vsyncpa [#allocation4], 0  ;;  %s2643_s0 = inlined_call_operand.hbm [shape: bf16[128,128], index: 0, kind: input, shape index: {}]   ;;  %s2644_s1 = inlined_call_operand.hbm [shape: bf16[128,128], index: 1, kind: input, shape index: {}]   ;;  %s2645_s2 = inlined_call_operand.hbm [shape: bf16[2,128,128], index: 2, kind: input, shape index: {}]   ;;  %s2646_s3 = inlined_call_operand.vmem [shape: f32[2,1,128], index: 3, kind: input, shape index: {}]   ;;  %s2647_s4 = inlined_call_operand.hbm [shape: bf16[128,128], index: 4, kind: output, shape index: {}]  }
   0x1   :  { %10 = vsyncpa [#allocation7], 0 }
   0x2   :  { %11 = vsyncpa [#allocation5], 0  ;;  %s2170_s15 = smov 0   ;;  %s2172_s16 = smov 0  }
   0x3   :  { %s2174_s17 = smov 0   ;;  %s2176_s18 = smov 0  }
   0x4   :  { %s2178_s19 = smov 0   ;;  %s2180_s20 = smov 0  }
   0x5 LB: > { %s2199_s21 = sadd.s32 4294967295, %s2136_s20   ;;  %p91_p0 = scmp.ne.s32.totalorder %s2120_s16, %s2116_s15  ;;  %s2136_s20 = sphi %s2180_s20, %s17_s20   ;;  %s2132_s19 = sphi %s2178_s19, %s2665_s19   ;;  %s2128_s18 = sphi %s2176_s18, %s2664_s18   ;;  %s2124_s17 = sphi %s2174_s17, %s2663_s17   ;;  %s2120_s16 = sphi %s2172_s16, %s2662_s16   ;;  %s2116_s15 = sphi %s2170_s15, %s2661_s15  }
   0x6   : > { %p92_p1 = scmp.eq.s32.totalorder %s2199_s21, 0  ;;  %p1316_p2 = scmp.ge.s32.totalorder %s2136_s20, 1 }
   0x7   : > { %p149_p3 = scmp.lt.s32.totalorder %s2136_s20, 3  ;;  %s160_s25 = sshll.u32 %s2643_s0, 4  ;;  %s161_s25 = int_to_ptr.hbm [resolvable:$true] %s160_s25 }
   0x8   : > { %p2207_p4 = por %p92_p1, %p91_p0  ;;  %s2138_s27 = smov [#allocation3]  }
   0x9   : > { %p2214_p5 = pnand %p1316_p2, %p149_p3  ;;  %s162_s28 = sshll.u32 %s2138_s27, 4  ;;  %s163_s28 = int_to_ptr.vmem [resolvable:$true] %s162_s28 }
   0xa   : > { %s174_s5 = sshll.u32 %s2644_s1, 4  ;;  %s2139_s6 = smov 64   ;;  %s175_s5 = int_to_ptr.hbm [resolvable:$true] %s174_s5 }
   0xb   : > { %p1850_p6 = pneg %p2214_p5  ;;  %s2140_s7 = smov 4  }
   0xc   : > { %s2141_s8 = smov [#allocation6]   ;;  %s29_s10 = sadd.s32 1, %s2132_s19 }
   0xd   : > { %p1851_p7 = pnand %p1850_p6, %p92_p1  ;;  %s176_s9 = sshll.u32 %s2141_s8, 4  ;;  %s177_s9 = int_to_ptr.vmem [resolvable:$true] %s176_s9 }
   0xe   : > { %p31_p8 = scmp.ge.s32.totalorder %s29_s10, 2  ;;  %p85_p9 = scmp.ne.s32.totalorder %s2124_s17, %s2120_s16 }
   0xf   : > { %1853 = dma.hbm_to_vmem [thread:$0]  (!%p1851_p7), %s161_s25, 1024, %s163_s28, [#allocation4], %s2139_s6, %s2139_s6, %s2140_s7  }
  0x10   : > { %1856 = dma.hbm_to_vmem [thread:$0]  (!%p1851_p7), %s175_s5, 1024, %s177_s9, [#allocation7], %s2139_s6, %s2139_s6, %s2140_s7  }
  0x11   : > { %s78_s11 = sadd.s32 1, %s2124_s17  ;;  %p86_p10 = scmp.eq.s32.totalorder %s2136_s20, 0 }
  0x12   : > { %s2667_s10 = smov (%p31_p8, %s29_s10), 0  ;;  %p1863_p12 = scmp.lt.s32.totalorder %s2136_s20, 2 }
  0x13   : > { %p2238_p11 = por %p86_p10, %p85_p9  ;;  %s75_s13 = ssub.s32 %s2132_s19, %s2667_s10 }
  0x14   : > { %s190_s14 = sand.u32 1, %s2136_s20   ;;  %p76_p13 = scmp.eq.s32.totalorder %s75_s13, 0 }
  0x15   : > { %s192_s15 = sand.u32 1, %s2124_s17   ;;  %s1527_s24 = sshll.u32 %s2132_s19, 6 }
  0x16   : > { %s1320_s23 = sshll.u32 %s192_s15, 6  ;;  %s199_s29 = scalar_lea.hbm %s2645_s2, %s1527_s24 }
  0x17   : > { %s2249_s25 = scalar_select %p76_p13, %s2124_s17, %s78_s11  }
  0x18   : > { %s200_s30 = sshll.u32 %s199_s29, 4  ;;  %s194_s5 = scalar_lea.vmem [#allocation8], %s1320_s23  ;;  %s201_s30 = int_to_ptr.hbm [resolvable:$true] %s200_s30 }
  0x19   : > { %s202_s8 = sshll.u32 %s194_s5, 4  ;;  %p1858_p0 = pnand %p1863_p12, %p2238_p11  ;;  %s203_s8 = int_to_ptr.vmem [resolvable:$true] %s202_s8 }
  0x1a   : > { %s191_s9 = scalar_lea.sflag [#allocation4], %s190_s14  ;;  %220 = sbr.rel (%p2214_p5) target bundleno = 844 (0x34c), region = 36 }
  0x1b   : > { %1860 = dma.hbm_to_vmem [thread:$0]  (!%p1858_p0), %s201_s30, 1024, %s203_s8, %s191_s9, %s2139_s6, %s2139_s6, %s2140_s7  }
  0x1f   : > { %2099 = dma.done.wait (%p92_p1), [#allocation4], 1024  }
  0x20   : > { %2101 = vsyncadd (%p92_p1), [#allocation4], 4294966272 }
  0x21   : > { %2103 = dma.done.wait (%p92_p1), [#allocation7], 1024  }
  0x22   : > { %2105 = vsyncadd (%p92_p1), [#allocation7], 4294966272  ;;  %s232_s11 = sand.u32 1, %s2199_s21   ;;  %s234_s6 = sand.u32 1, %s2120_s16  }
  0x23   : > { %s1326_s7 = sshll.u32 %s234_s6, 6  ;;  %s233_s26 = scalar_lea.sflag [#allocation4], %s232_s11 }
  0x24   : > { %s2273_s12 = scalar_lea.vmem [#allocation8], %s1326_s7 }
  0x25   : > { %2107 = dma.done.wait (%p2207_p4), %s233_s26, 1024  }
  0x26   : > { %2109 = vsyncadd (%p2207_p4), %s233_s26, 4294966272  ;;  %p260_p2 = scmp.lt.s32.totalorder %s2128_s18, 1  ;;  %p1327_p1 = scmp.ne.s32.totalorder %s2128_s18, 0 }
  0x28   : > { %s2281_s13 = scalar_select %p260_p2, %s2128_s18, 1 }
  0x29   : > { %271 = sbr.rel (%p1327_p1) target bundleno = 239 (0xef), region = 56 }
  0x2a   : > { %s262_s23 = scalar_lea.vmem %s2646_s3, %s2281_s13 }
  0x2e   : > { %v1543_v0 = vld [vmem:[%s2273_s12 + $0x38] sm:$0xff]  ;;  %v1542_v1 = vld [vmem:[%s2273_s12 + $0x30] sm:$0xff]  ;;  %v1541_v2 = vld [vmem:[%s2273_s12 + $0x28] sm:$0xff] }
  0x2f   : > { %400 = vmatpush.bf16.msra.mxu0 %v1543_v0  ;;  %1764 = vmatpush.bf16.msra.mxu1 %v1543_v0  ;;  %v1540_v3 = vld [vmem:[%s2273_s12 + $0x20] sm:$0xff]  ;;  %v1539_v4 = vld [vmem:[%s2273_s12 + $0x18] sm:$0xff]  ;;  %v1538_v5 = vld [vmem:[%s2273_s12 + $0x10] sm:$0xff] }
  0x30   : > { %1765 = vmatpush.bf16.msra.mxu2 %v1543_v0  ;;  %1766 = vmatpush.bf16.msra.mxu3 %v1543_v0  ;;  %v1537_v6 = vld [vmem:[%s2273_s12 + $0x8] sm:$0xff]  ;;  %v1536_v7 = vld [vmem:[%s2273_s12] sm:$0xff]  ;;  %v1530_v9 = vld [vmem:[#allocation6 + $0x10] sm:$0xff] }
  0x31   : > { %v1528_v8 = vld [vmem:[#allocation6] sm:$0xff]  ;;  %v1534_v11 = vld [vmem:[#allocation6 + $0x30] sm:$0xff]  ;;  %v1529_v12 = vld [vmem:[#allocation6 + $0x8] sm:$0xff] }
  0x32   : > { %v1532_v10 = vld [vmem:[#allocation6 + $0x20] sm:$0xff]  ;;  %v1531_v13 = vld [vmem:[#allocation6 + $0x18] sm:$0xff]  ;;  %v1533_v14 = vld [vmem:[#allocation6 + $0x28] sm:$0xff] }
  0x33   : > { %401 = vmatpush.bf16.msra.mxu0 %v1542_v1  ;;  %1767 = vmatpush.bf16.msra.mxu1 %v1542_v1  ;;  %v1535_v15 = vld [vmem:[#allocation6 + $0x38] sm:$0xff] }
  0x34   : > { %1768 = vmatpush.bf16.msra.mxu2 %v1542_v1  ;;  %1769 = vmatpush.bf16.msra.mxu3 %v1542_v1 }
  0x37   : > { %402 = vmatpush.bf16.msra.mxu0 %v1541_v2  ;;  %1770 = vmatpush.bf16.msra.mxu1 %v1541_v2 }
  0x38   : > { %1771 = vmatpush.bf16.msra.mxu2 %v1541_v2  ;;  %1772 = vmatpush.bf16.msra.mxu3 %v1541_v2 }
  0x3b   : > { %403 = vmatpush.bf16.msra.mxu0 %v1540_v3  ;;  %1773 = vmatpush.bf16.msra.mxu1 %v1540_v3 }
  0x3c   : > { %1774 = vmatpush.bf16.msra.mxu2 %v1540_v3  ;;  %1775 = vmatpush.bf16.msra.mxu3 %v1540_v3 }
  0x3f   : > { %404 = vmatpush.bf16.msra.mxu0 %v1539_v4  ;;  %1776 = vmatpush.bf16.msra.mxu1 %v1539_v4 }
  0x40   : > { %1777 = vmatpush.bf16.msra.mxu2 %v1539_v4  ;;  %1778 = vmatpush.bf16.msra.mxu3 %v1539_v4 }
  0x43   : > { %405 = vmatpush.bf16.msra.mxu0 %v1538_v5  ;;  %1779 = vmatpush.bf16.msra.mxu1 %v1538_v5 }
  0x44   : > { %1780 = vmatpush.bf16.msra.mxu2 %v1538_v5  ;;  %1781 = vmatpush.bf16.msra.mxu3 %v1538_v5 }
  0x47   : > { %406 = vmatpush.bf16.msra.mxu0 %v1537_v6  ;;  %1782 = vmatpush.bf16.msra.mxu1 %v1537_v6 }
  0x48   : > { %1783 = vmatpush.bf16.msra.mxu2 %v1537_v6  ;;  %1784 = vmatpush.bf16.msra.mxu3 %v1537_v6 }
  0x4b   : > { %407 = vmatpush.bf16.msra.mxu0 %v1536_v7  ;;  %1785 = vmatpush.bf16.msra.mxu1 %v1536_v7 }
  0x4c   : > { %1786 = vmatpush.bf16.msra.mxu2 %v1536_v7  ;;  %1787 = vmatpush.bf16.msra.mxu3 %v1536_v7 }
  0x4e   : > { %408 = vmatmul.bf16.vlgmr.msra.gmra.mxu0 %v1528_v8  ;;  %418 = vmatmul.bf16.vlgmr.msra.gmra.mxu1 %v1530_v9 }
  0x4f   : > { %428 = vmatmul.bf16.vlgmr.msra.gmra.mxu2 %v1532_v10  ;;  %438 = vmatmul.bf16.vlgmr.msra.gmra.mxu3 %v1534_v11 }
  0x5e   : > { %413 = vmatmul.bf16.gmra.mxu0 %v1529_v12  ;;  %423 = vmatmul.bf16.gmra.mxu1 %v1531_v13 }
  0x5f   : > { %433 = vmatmul.bf16.gmra.mxu2 %v1533_v14  ;;  %443 = vmatmul.bf16.gmra.mxu3 %v1535_v15 }
  0xcb   : > { %v409_v16 = vpop.f32.mrf.mxu0  ;;  %v419_v17 = vpop.f32.mrf.mxu1 }
  0xd2   : > { %v429_v18 = vpop.f32.mrf.mxu2  ;;  %v439_v19 = vpop.f32.mrf.mxu3 }
  0xd3   : > { %v411_v20 = vpop.f32.mrf.mxu0  ;;  %v421_v21 = vpop.f32.mrf.mxu1 }
  0xd4   : > { %v1579_v22 = vpack.c.bf16 %v411_v20, %v409_v16  ;;  %v1589_v23 = vpack.c.bf16 %v421_v21, %v419_v17 }
  0xd6   : > { %1580 = vst [vmem:[#allocation2 + $0x30] sm:$0xff] %v1579_v22  }
  0xd7   : > { %1737 = vst [vmem:[#allocation2 + $0x18] sm:$0xff] %v1589_v23  }
  0xda   : > { %v431_v24 = vpop.f32.mrf.mxu2  ;;  %v441_v25 = vpop.f32.mrf.mxu3 }
  0xdb   : > { %v1599_v26 = vpack.c.bf16 %v431_v24, %v429_v18  ;;  %v1609_v27 = vpack.c.bf16 %v441_v25, %v439_v19  ;;  %v414_v28 = vpop.f32.mrf.mxu0  ;;  %v424_v29 = vpop.f32.mrf.mxu1 }
  0xdd   : > { %1739 = vst [vmem:[#allocation2 + $0x8] sm:$0xff] %v1599_v26  }
  0xde   : > { %1741 = vst [vmem:[#allocation2 + $0x28] sm:$0xff] %v1609_v27  }
  0xe2   : > { %v434_v30 = vpop.f32.mrf.mxu2  ;;  %v444_v31 = vpop.f32.mrf.mxu3 }
  0xe3   : > { %v416_v32 = vpop.f32.mrf.mxu0  ;;  %v426_v33 = vpop.f32.mrf.mxu1 }
  0xe4   : > { %v1584_v34 = vpack.c.bf16 %v416_v32, %v414_v28  ;;  %v1594_v35 = vpack.c.bf16 %v426_v33, %v424_v29 }
  0xe6   : > { %1736 = vst [vmem:[#allocation2] sm:$0xff] %v1584_v34  }
  0xe7   : > { %1738 = vst [vmem:[#allocation2 + $0x10] sm:$0xff] %v1594_v35  }
  0xea   : > { %v436_v36 = vpop.f32.mrf.mxu2  ;;  %v446_v37 = vpop.f32.mrf.mxu3 }
  0xeb   : > { %v1604_v38 = vpack.c.bf16 %v436_v36, %v434_v30  ;;  %v1614_v39 = vpack.c.bf16 %v446_v37, %v444_v31 }
  0xed   : > { %1740 = vst [vmem:[#allocation2 + $0x20] sm:$0xff] %v1604_v38  }
  0xee   : > { %1742 = vst [vmem:[#allocation2 + $0x38] sm:$0xff] %v1614_v39  }
  0xef PF: > { %p1392_p3 = scmp.le.s32.totalorder %s2128_s18, 0 }
  0xf1   : > { %484 = sbr.rel (%p1392_p3) target bundleno = 439 (0x1b7), region = 60 }
  0xf6   : > { %v1559_v40 = vld [vmem:[%s2273_s12 + $0x38] sm:$0xff]  ;;  %v1558_v41 = vld [vmem:[%s2273_s12 + $0x30] sm:$0xff]  ;;  %v1557_v42 = vld [vmem:[%s2273_s12 + $0x28] sm:$0xff] }
  0xf7   : > { %613 = vmatpush.bf16.msra.mxu0 %v1559_v40  ;;  %1788 = vmatpush.bf16.msra.mxu1 %v1559_v40  ;;  %v1556_v43 = vld [vmem:[%s2273_s12 + $0x20] sm:$0xff]  ;;  %v1555_v44 = vld [vmem:[%s2273_s12 + $0x18] sm:$0xff]  ;;  %v1554_v45 = vld [vmem:[%s2273_s12 + $0x10] sm:$0xff] }
  0xf8   : > { %1789 = vmatpush.bf16.msra.mxu2 %v1559_v40  ;;  %1790 = vmatpush.bf16.msra.mxu3 %v1559_v40  ;;  %v1553_v46 = vld [vmem:[%s2273_s12 + $0x8] sm:$0xff]  ;;  %v1552_v47 = vld [vmem:[%s2273_s12] sm:$0xff]  ;;  %v1546_v49 = vld [vmem:[#allocation9 + $0x10] sm:$0xff] }
  0xf9   : > { %v1544_v48 = vld [vmem:[#allocation9] sm:$0xff]  ;;  %v1550_v51 = vld [vmem:[#allocation9 + $0x30] sm:$0xff]  ;;  %v1545_v52 = vld [vmem:[#allocation9 + $0x8] sm:$0xff] }
  0xfa   : > { %v1548_v50 = vld [vmem:[#allocation9 + $0x20] sm:$0xff]  ;;  %v1547_v53 = vld [vmem:[#allocation9 + $0x18] sm:$0xff]  ;;  %v1549_v54 = vld [vmem:[#allocation9 + $0x28] sm:$0xff] }
  0xfb   : > { %614 = vmatpush.bf16.msra.mxu0 %v1558_v41  ;;  %1791 = vmatpush.bf16.msra.mxu1 %v1558_v41  ;;  %v1551_v55 = vld [vmem:[#allocation9 + $0x38] sm:$0xff] }
  0xfc   : > { %1792 = vmatpush.bf16.msra.mxu2 %v1558_v41  ;;  %1793 = vmatpush.bf16.msra.mxu3 %v1558_v41 }
  0xff   : > { %615 = vmatpush.bf16.msra.mxu0 %v1557_v42  ;;  %1794 = vmatpush.bf16.msra.mxu1 %v1557_v42 }
 0x100   : > { %1795 = vmatpush.bf16.msra.mxu2 %v1557_v42  ;;  %1796 = vmatpush.bf16.msra.mxu3 %v1557_v42 }
 0x103   : > { %616 = vmatpush.bf16.msra.mxu0 %v1556_v43  ;;  %1797 = vmatpush.bf16.msra.mxu1 %v1556_v43 }
 0x104   : > { %1798 = vmatpush.bf16.msra.mxu2 %v1556_v43  ;;  %1799 = vmatpush.bf16.msra.mxu3 %v1556_v43 }
 0x107   : > { %617 = vmatpush.bf16.msra.mxu0 %v1555_v44  ;;  %1800 = vmatpush.bf16.msra.mxu1 %v1555_v44 }
 0x108   : > { %1801 = vmatpush.bf16.msra.mxu2 %v1555_v44  ;;  %1802 = vmatpush.bf16.msra.mxu3 %v1555_v44 }
 0x10b   : > { %618 = vmatpush.bf16.msra.mxu0 %v1554_v45  ;;  %1803 = vmatpush.bf16.msra.mxu1 %v1554_v45 }
 0x10c   : > { %1804 = vmatpush.bf16.msra.mxu2 %v1554_v45  ;;  %1805 = vmatpush.bf16.msra.mxu3 %v1554_v45 }
 0x10f   : > { %619 = vmatpush.bf16.msra.mxu0 %v1553_v46  ;;  %1806 = vmatpush.bf16.msra.mxu1 %v1553_v46 }
 0x110   : > { %1807 = vmatpush.bf16.msra.mxu2 %v1553_v46  ;;  %1808 = vmatpush.bf16.msra.mxu3 %v1553_v46 }
 0x113   : > { %620 = vmatpush.bf16.msra.mxu0 %v1552_v47  ;;  %1809 = vmatpush.bf16.msra.mxu1 %v1552_v47 }
 0x114   : > { %1810 = vmatpush.bf16.msra.mxu2 %v1552_v47  ;;  %1811 = vmatpush.bf16.msra.mxu3 %v1552_v47 }
 0x116   : > { %621 = vmatmul.bf16.vlgmr.msra.gmra.mxu0 %v1544_v48  ;;  %631 = vmatmul.bf16.vlgmr.msra.gmra.mxu1 %v1546_v49 }
 0x117   : > { %641 = vmatmul.bf16.vlgmr.msra.gmra.mxu2 %v1548_v50  ;;  %651 = vmatmul.bf16.vlgmr.msra.gmra.mxu3 %v1550_v51 }
 0x126   : > { %626 = vmatmul.bf16.gmra.mxu0 %v1545_v52  ;;  %636 = vmatmul.bf16.gmra.mxu1 %v1547_v53 }
 0x127   : > { %646 = vmatmul.bf16.gmra.mxu2 %v1549_v54  ;;  %656 = vmatmul.bf16.gmra.mxu3 %v1551_v55 }
 0x193   : > { %v622_v56 = vpop.f32.mrf.mxu0  ;;  %v632_v57 = vpop.f32.mrf.mxu1 }
 0x19a   : > { %v642_v58 = vpop.f32.mrf.mxu2  ;;  %v652_v59 = vpop.f32.mrf.mxu3 }
 0x19b   : > { %v624_v60 = vpop.f32.mrf.mxu0  ;;  %v634_v61 = vpop.f32.mrf.mxu1 }
 0x19c   : > { %v1619_v62 = vpack.c.bf16 %v624_v60, %v622_v56  ;;  %v1629_v63 = vpack.c.bf16 %v634_v61, %v632_v57 }
 0x19e   : > { %1620 = vst [vmem:[#allocation2 + $0x30] sm:$0xff] %v1619_v62  }
 0x19f   : > { %1744 = vst [vmem:[#allocation2 + $0x18] sm:$0xff] %v1629_v63  }
 0x1a2   : > { %v644_v0 = vpop.f32.mrf.mxu2  ;;  %v654_v1 = vpop.f32.mrf.mxu3 }
 0x1a3   : > { %v1639_v2 = vpack.c.bf16 %v644_v0, %v642_v58  ;;  %v1649_v3 = vpack.c.bf16 %v654_v1, %v652_v59  ;;  %v627_v4 = vpop.f32.mrf.mxu0  ;;  %v637_v5 = vpop.f32.mrf.mxu1 }
 0x1a5   : > { %1746 = vst [vmem:[#allocation2 + $0x8] sm:$0xff] %v1639_v2  }
 0x1a6   : > { %1748 = vst [vmem:[#allocation2 + $0x28] sm:$0xff] %v1649_v3  }
 0x1aa   : > { %v647_v6 = vpop.f32.mrf.mxu2  ;;  %v657_v7 = vpop.f32.mrf.mxu3 }
 0x1ab   : > { %v629_v8 = vpop.f32.mrf.mxu0  ;;  %v639_v9 = vpop.f32.mrf.mxu1 }
 0x1ac   : > { %v1624_v10 = vpack.c.bf16 %v629_v8, %v627_v4  ;;  %v1634_v11 = vpack.c.bf16 %v639_v9, %v637_v5 }
 0x1ae   : > { %1743 = vst [vmem:[#allocation2] sm:$0xff] %v1624_v10  }
 0x1af   : > { %1745 = vst [vmem:[#allocation2 + $0x10] sm:$0xff] %v1634_v11  }
 0x1b2   : > { %v649_v12 = vpop.f32.mrf.mxu2  ;;  %v659_v13 = vpop.f32.mrf.mxu3 }
 0x1b3   : > { %v1644_v14 = vpack.c.bf16 %v649_v12, %v647_v6  ;;  %v1654_v15 = vpack.c.bf16 %v659_v13, %v657_v7 }
 0x1b5   : > { %1747 = vst [vmem:[#allocation2 + $0x20] sm:$0xff] %v1644_v14  }
 0x1b6   : > { %1749 = vst [vmem:[#allocation2 + $0x38] sm:$0xff] %v1654_v15  }
 0x1b7 PF: > { %v1574_v17 = vld [vmem:[#allocation2 + $0x28] sm:$0xff]  ;;  %v1571_v20 = vld [vmem:[#allocation2 + $0x10] sm:$0xff]  ;;  %v1570_v21 = vld [vmem:[#allocation2 + $0x18] sm:$0xff]  ;;  %p1521_p4 = scmp.ge.s32.totalorder %s2128_s18, 1 }
 0x1b8   : > { %v1572_v19 = vld [vmem:[#allocation2 + $0x8] sm:$0xff]  ;;  %v1569_v22 = vld [vmem:[#allocation2] sm:$0xff]  ;;  %v1568_v23 = vld [vmem:[#allocation2 + $0x30] sm:$0xff] }
 0x1b9   : > { %v1560_v24 = vld [vmem:[#allocation3] sm:$0xff]  ;;  %v1562_v25 = vld [vmem:[#allocation3 + $0x10] sm:$0xff]  ;;  %v1561_v28 = vld [vmem:[#allocation3 + $0x8] sm:$0xff] }
 0x1ba   : > { %v1564_v26 = vld [vmem:[#allocation3 + $0x20] sm:$0xff]  ;;  %v1566_v27 = vld [vmem:[#allocation3 + $0x30] sm:$0xff]  ;;  %v1563_v29 = vld [vmem:[#allocation3 + $0x18] sm:$0xff] }
 0x1bb   : > { %v1565_v30 = vld [vmem:[#allocation3 + $0x28] sm:$0xff]  ;;  %v1567_v31 = vld [vmem:[#allocation3 + $0x38] sm:$0xff]  ;;  %v1923_v32 = vld [vmem:[%s262_s23] ss:$0 sm:$0xff] }
 0x1bc   : > { %v1573_v18 = vld [vmem:[#allocation2 + $0x20] sm:$0xff] }
 0x1bd   : > { %v1575_v16 = vld [vmem:[#allocation2 + $0x38] sm:$0xff] }
 0x1be   : > { %830 = vmatpush.bf16.msra.mxu0 %v1575_v16  ;;  %1812 = vmatpush.bf16.msra.mxu1 %v1575_v16 }
 0x1bf   : > { %1813 = vmatpush.bf16.msra.mxu2 %v1575_v16  ;;  %1814 = vmatpush.bf16.msra.mxu3 %v1575_v16 }
 0x1c2   : > { %831 = vmatpush.bf16.msra.mxu0 %v1574_v17  ;;  %1815 = vmatpush.bf16.msra.mxu1 %v1574_v17 }
 0x1c3   : > { %1816 = vmatpush.bf16.msra.mxu2 %v1574_v17  ;;  %1817 = vmatpush.bf16.msra.mxu3 %v1574_v17 }
 0x1c6   : > { %832 = vmatpush.bf16.msra.mxu0 %v1573_v18  ;;  %1818 = vmatpush.bf16.msra.mxu1 %v1573_v18 }
 0x1c7   : > { %1819 = vmatpush.bf16.msra.mxu2 %v1573_v18  ;;  %1820 = vmatpush.bf16.msra.mxu3 %v1573_v18 }
 0x1ca   : > { %833 = vmatpush.bf16.msra.mxu0 %v1572_v19  ;;  %1821 = vmatpush.bf16.msra.mxu1 %v1572_v19 }
 0x1cb   : > { %1822 = vmatpush.bf16.msra.mxu2 %v1572_v19  ;;  %1823 = vmatpush.bf16.msra.mxu3 %v1572_v19 }
 0x1ce   : > { %834 = vmatpush.bf16.msra.mxu0 %v1571_v20  ;;  %1824 = vmatpush.bf16.msra.mxu1 %v1571_v20 }
 0x1cf   : > { %1825 = vmatpush.bf16.msra.mxu2 %v1571_v20  ;;  %1826 = vmatpush.bf16.msra.mxu3 %v1571_v20 }
 0x1d2   : > { %835 = vmatpush.bf16.msra.mxu0 %v1570_v21  ;;  %1827 = vmatpush.bf16.msra.mxu1 %v1570_v21 }
 0x1d3   : > { %1828 = vmatpush.bf16.msra.mxu2 %v1570_v21  ;;  %1829 = vmatpush.bf16.msra.mxu3 %v1570_v21 }
 0x1d6   : > { %836 = vmatpush.bf16.msra.mxu0 %v1569_v22  ;;  %1830 = vmatpush.bf16.msra.mxu1 %v1569_v22 }
 0x1d7   : > { %1831 = vmatpush.bf16.msra.mxu2 %v1569_v22  ;;  %1832 = vmatpush.bf16.msra.mxu3 %v1569_v22 }
 0x1da   : > { %837 = vmatpush.bf16.msra.mxu0 %v1568_v23  ;;  %1833 = vmatpush.bf16.msra.mxu1 %v1568_v23 }
 0x1db   : > { %1834 = vmatpush.bf16.msra.mxu2 %v1568_v23  ;;  %1835 = vmatpush.bf16.msra.mxu3 %v1568_v23 }
 0x1dd   : > { %838 = vmatmul.bf16.vlgmr.msra.gmra.mxu0 %v1560_v24  ;;  %848 = vmatmul.bf16.vlgmr.msra.gmra.mxu1 %v1562_v25 }
 0x1de   : > { %858 = vmatmul.bf16.vlgmr.msra.gmra.mxu2 %v1564_v26  ;;  %868 = vmatmul.bf16.vlgmr.msra.gmra.mxu3 %v1566_v27 }
 0x1ed   : > { %843 = vmatmul.bf16.gmra.mxu0 %v1561_v28  ;;  %853 = vmatmul.bf16.gmra.mxu1 %v1563_v29 }
 0x1ee   : > { %863 = vmatmul.bf16.gmra.mxu2 %v1565_v30  ;;  %873 = vmatmul.bf16.gmra.mxu3 %v1567_v31 }
 0x25a   : > { %v839_v33 = vpop.f32.mrf.mxu0  ;;  %v849_v34 = vpop.f32.mrf.mxu1 }
 0x25b   : > { %v840_v35 = vadd.f32 %v1923_v32, %v839_v33  ;;  %v850_v36 = vadd.f32 %v1923_v32, %v849_v34 }
 0x25d   : > { %v2310_v37 = vmax.f32 %v840_v35, 0.0  ;;  %v2312_v38 = vmax.f32 %v850_v36, 0.0 }
 0x261   : > { %v859_v39 = vpop.f32.mrf.mxu2  ;;  %v869_v40 = vpop.f32.mrf.mxu3 }
 0x262   : > { %v860_v41 = vadd.f32 %v1923_v32, %v859_v39  ;;  %v870_v42 = vadd.f32 %v1923_v32, %v869_v40  ;;  %v841_v43 = vpop.f32.mrf.mxu0  ;;  %v851_v44 = vpop.f32.mrf.mxu1 }
 0x263   : > { %v842_v45 = vadd.f32 %v1923_v32, %v841_v43  ;;  %v852_v46 = vadd.f32 %v1923_v32, %v851_v44 }
 0x264   : > { %v2314_v47 = vmax.f32 %v860_v41, 0.0  ;;  %v2316_v48 = vmax.f32 %v870_v42, 0.0 }
 0x265   : > { %v2318_v49 = vmax.f32 %v842_v45, 0.0  ;;  %v2320_v50 = vmax.f32 %v852_v46, 0.0 }
 0x269   : > { %v861_v51 = vpop.f32.mrf.mxu2  ;;  %v871_v52 = vpop.f32.mrf.mxu3 }
 0x26a   : > { %v862_v53 = vadd.f32 %v1923_v32, %v861_v51  ;;  %v872_v54 = vadd.f32 %v1923_v32, %v871_v52  ;;  %v844_v55 = vpop.f32.mrf.mxu0  ;;  %v854_v56 = vpop.f32.mrf.mxu1 }
 0x26b   : > { %v845_v57 = vadd.f32 %v1923_v32, %v844_v55  ;;  %v855_v58 = vadd.f32 %v1923_v32, %v854_v56 }
 0x26c   : > { %v2322_v59 = vmax.f32 %v862_v53, 0.0  ;;  %v2324_v60 = vmax.f32 %v872_v54, 0.0 }
 0x26d   : > { %v2326_v61 = vmax.f32 %v845_v57, 0.0  ;;  %v2328_v62 = vmax.f32 %v855_v58, 0.0 }
 0x271   : > { %v864_v63 = vpop.f32.mrf.mxu2  ;;  %v874_v0 = vpop.f32.mrf.mxu3 }
 0x272   : > { %v865_v1 = vadd.f32 %v1923_v32, %v864_v63  ;;  %v875_v2 = vadd.f32 %v1923_v32, %v874_v0  ;;  %v846_v3 = vpop.f32.mrf.mxu0  ;;  %v856_v4 = vpop.f32.mrf.mxu1 }
 0x273   : > { %v847_v5 = vadd.f32 %v1923_v32, %v846_v3  ;;  %v857_v6 = vadd.f32 %v1923_v32, %v856_v4 }
 0x274   : > { %v2330_v7 = vmax.f32 %v865_v1, 0.0  ;;  %v2332_v8 = vmax.f32 %v875_v2, 0.0 }
 0x275   : > { %v2334_v9 = vmax.f32 %v847_v5, 0.0  ;;  %v2336_v10 = vmax.f32 %v857_v6, 0.0 }
 0x278   : > { %898 = sbr.rel (%p1521_p4) target bundleno = 647 (0x287), region = 64 }
 0x279   : > { %v866_v11 = vpop.f32.mrf.mxu2  ;;  %v876_v12 = vpop.f32.mrf.mxu3 }
 0x27a   : > { %v867_v13 = vadd.f32 %v1923_v32, %v866_v11  ;;  %v877_v14 = vadd.f32 %v1923_v32, %v876_v12 }
 0x27c   : > { %v2338_v15 = vmax.f32 %v867_v13, 0.0  ;;  %v2340_v16 = vmax.f32 %v877_v14, 0.0 }
 0x27d   : > { %v1659_v17 = vpack.c.bf16 %v2318_v49, %v2310_v37  ;;  %v1664_v18 = vpack.c.bf16 %v2334_v9, %v2326_v61  ;;  %v1669_v19 = vpack.c.bf16 %v2320_v50, %v2312_v38  ;;  %v1674_v20 = vpack.c.bf16 %v2336_v10, %v2328_v62 }
 0x27e   : > { %v1679_v21 = vpack.c.bf16 %v2322_v59, %v2314_v47  ;;  %v1684_v22 = vpack.c.bf16 %v2338_v15, %v2330_v7  ;;  %v1689_v23 = vpack.c.bf16 %v2324_v60, %v2316_v48  ;;  %v1694_v24 = vpack.c.bf16 %v2340_v16, %v2332_v8 }
 0x27f   : > { %1660 = vst [vmem:[#allocation9] sm:$0xff] %v1659_v17  }
 0x280   : > { %1750 = vst [vmem:[#allocation9 + $0x8] sm:$0xff] %v1664_v18  }
 0x281   : > { %1751 = vst [vmem:[#allocation9 + $0x10] sm:$0xff] %v1669_v19  }
 0x282   : > { %1752 = vst [vmem:[#allocation9 + $0x18] sm:$0xff] %v1674_v20  }
 0x283   : > { %1753 = vst [vmem:[#allocation9 + $0x20] sm:$0xff] %v1679_v21  }
 0x284   : > { %1754 = vst [vmem:[#allocation9 + $0x28] sm:$0xff] %v1684_v22  }
 0x285   : > { %1755 = vst [vmem:[#allocation9 + $0x30] sm:$0xff] %v1689_v23  }
 0x286   : > { %1756 = vst [vmem:[#allocation9 + $0x38] sm:$0xff] %v1694_v24  }
 0x287 PF: > { %p1522_p5 = scmp.ne.s32.totalorder %s2128_s18, 1 }
 0x289   : > { %936 = sbr.rel (%p1522_p5) target bundleno = 838 (0x346), region = 68 }
 0x28e   : > { %v941_v25 = vmul.f32 %v2312_v38, %v2312_v38  ;;  %v939_v26 = vmul.f32 %v2326_v61, %v2326_v61  ;;  %v937_v27 = vmul.f32 %v2310_v37, %v2310_v37  ;;  %v942_v28 = vmul.f32 %v2320_v50, %v2320_v50 }
 0x28f   : > { %v940_v29 = vmul.f32 %v2334_v9, %v2334_v9  ;;  %v938_v30 = vmul.f32 %v2318_v49, %v2318_v49  ;;  %v945_v31 = vmul.f32 %v2314_v47, %v2314_v47  ;;  %v944_v32 = vmul.f32 %v2336_v10, %v2336_v10 }
 0x290   : > { %961 = vadd.xlane.f32.xlu2 %v941_v25  ;;  %957 = vadd.xlane.f32.xlu1 %v939_v26  ;;  %v943_v33 = vmul.f32 %v2328_v62, %v2328_v62  ;;  %v948_v34 = vmul.f32 %v2338_v15, %v2338_v15  ;;  %v947_v35 = vmul.f32 %v2330_v7, %v2330_v7 }
 0x291   : > { %953 = vadd.xlane.f32.xlu0 %v937_v27  ;;  %v946_v36 = vmul.f32 %v2322_v59, %v2322_v59  ;;  %v951_v39 = vmul.f32 %v2332_v8, %v2332_v8  ;;  %v950_v40 = vmul.f32 %v2324_v60, %v2324_v60  ;;  %v949_v41 = vmul.f32 %v2316_v48, %v2316_v48 }
 0x292   : > { %v952_v42 = vmul.f32 %v2340_v16, %v2340_v16 }
 0x298   : > { %963 = vadd.xlane.f32.xlu2 %v942_v28  ;;  %959 = vadd.xlane.f32.xlu1 %v940_v29 }
 0x299   : > { %955 = vadd.xlane.f32.xlu0 %v938_v30 }
 0x2a0   : > { %969 = vadd.xlane.f32.xlu2 %v945_v31  ;;  %967 = vadd.xlane.f32.xlu1 %v944_v32 }
 0x2a1   : > { %965 = vadd.xlane.f32.xlu0 %v943_v33 }
 0x2a8   : > { %975 = vadd.xlane.f32.xlu2 %v948_v34  ;;  %973 = vadd.xlane.f32.xlu1 %v947_v35 }
 0x2a9   : > { %971 = vadd.xlane.f32.xlu0 %v946_v36 }
 0x2b0   : > { %981 = vadd.xlane.f32.xlu2 %v951_v39  ;;  %979 = vadd.xlane.f32.xlu1 %v950_v40 }
 0x2b1   : > { %977 = vadd.xlane.f32.xlu0 %v949_v41 }
 0x2b9   : > { %983 = vadd.xlane.f32.xlu0 %v952_v42 }
 0x303   : > { %v962_v43 = vpop.xlane.xlu2 %961  ;;  %v958_v44 = vpop.xlane.xlu1 %957 }
 0x304   : > { %v989_v45 = vmax.f32 %v962_v43, 1e-24  ;;  %v2392_v46 = vmax.f32 %v958_v44, 1e-24  ;;  %v954_v51 = vpop.xlane.xlu0 %953 }
 0x305   : > { %v2394_v52 = vmax.f32 %v954_v51, 1e-24 }
 0x306   : > { %1924 = vrsqrt.f32 %v989_v45  ;;  %vm1047_vm0 = vweird.f32 %v989_v45  ;;  %vm1027_vm1 = vweird.f32 %v2392_v46 }
 0x307   : > { %1926 = vrsqrt.f32 %v2392_v46  ;;  %vm1007_vm3 = vweird.f32 %v2394_v52 }
 0x308   : > { %1928 = vrsqrt.f32 %v2394_v52 }
 0x30b   : > { %v964_v53 = vpop.xlane.xlu2 %963  ;;  %v960_v54 = vpop.xlane.xlu1 %959 }
 0x30c   : > { %v2398_v55 = vpop.eup %1924  ;;  %v2400_v56 = vmax.f32 %v964_v53, 1e-24  ;;  %v2402_v57 = vmax.f32 %v960_v54, 1e-24  ;;  %v956_v58 = vpop.xlane.xlu0 %955 }
 0x30d   : > { %v2404_v63 = vpop.eup %1926  ;;  %v1042_v0 = vmul.f32 %v2398_v55, %v989_v45  ;;  %v2407_v1 = vmax.f32 %v956_v58, 1e-24  ;;  %vm1048_vm2 = vweird.f32 %v2398_v55 }
 0x30e   : > { %v2409_v2 = vpop.eup %1928  ;;  %v1022_v3 = vmul.f32 %v2404_v63, %v2392_v46  ;;  %1930 = vrsqrt.f32 %v2400_v56  ;;  %vm1028_vm4 = vweird.f32 %v2404_v63  ;;  %vm1057_vm5 = vweird.f32 %v2400_v56  ;;  %vm2453_vm10 = vmor %vm1047_vm0, %vm1048_vm2 }
 0x30f   : > { %v1043_v4 = vmul.f32 %v2398_v55, %v1042_v0  ;;  %v1002_v5 = vmul.f32 %v2409_v2, %v2394_v52  ;;  %1932 = vrsqrt.f32 %v2402_v57  ;;  %vm1008_vm6 = vweird.f32 %v2409_v2  ;;  %vm2469_vm12 = vmor %vm1027_vm1, %vm1028_vm4 }
 0x310   : > { %v1023_v6 = vmul.f32 %v2404_v63, %v1022_v3  ;;  %1934 = vrsqrt.f32 %v2407_v1  ;;  %vm1037_vm7 = vweird.f32 %v2402_v57  ;;  %vm1017_vm8 = vweird.f32 %v2407_v1  ;;  %vm2484_vm13 = vmor %vm1007_vm3, %vm1008_vm6 }
 0x311   : > { %v1044_v11 = vmul.f32 0.5, %v1043_v4  ;;  %v1003_v12 = vmul.f32 %v2409_v2, %v1002_v5 }
 0x312   : > { %v1024_v13 = vmul.f32 0.5, %v1023_v6 }
 0x313   : > { %v1004_v14 = vmul.f32 0.5, %v1003_v12  ;;  %v970_v17 = vpop.xlane.xlu2 %969  ;;  %v968_v18 = vpop.xlane.xlu1 %967  ;;  %v1045_v20 = vsub.f32 1.5, %v1044_v11 }
 0x314   : > { %v2421_v19 = vpop.eup %1930  ;;  %v2424_v21 = vmax.f32 %v970_v17, 1e-24  ;;  %v966_v22 = vpop.xlane.xlu0 %965  ;;  %v1025_v24 = vsub.f32 1.5, %v1024_v13  ;;  %v2435_v29 = vmax.f32 %v968_v18, 1e-24 }
 0x315   : > { %v2426_v23 = vpop.eup %1932  ;;  %v1052_v25 = vmul.f32 %v2421_v19, %v2400_v56  ;;  %v1005_v27 = vsub.f32 1.5, %v1004_v14  ;;  %v1046_v32 = vmul.f32 %v2398_v55, %v1045_v20  ;;  %vm1058_vm9 = vweird.f32 %v2421_v19 }
 0x316   : > { %v1935_v26 = vpop.eup %1934  ;;  %v1032_v28 = vmul.f32 %v2426_v23, %v2402_v57  ;;  %1936 = vrsqrt.f32 %v2424_v21  ;;  %v1026_v34 = vmul.f32 %v2404_v63, %v1025_v24  ;;  %vm1038_vm11 = vweird.f32 %v2426_v23  ;;  %vm1059_vm15 = vmor %vm1057_vm5, %vm1058_vm9 }
 0x317   : > { %v1053_v30 = vmul.f32 %v2421_v19, %v1052_v25  ;;  %v1012_v31 = vmul.f32 %v1935_v26, %v2407_v1  ;;  %v1006_v39 = vmul.f32 %v2409_v2, %v1005_v27  ;;  %1938 = vrsqrt.f32 %v2435_v29  ;;  %vm1039_vm0 = vmor %vm1037_vm7, %vm1038_vm11 }
 0x318   : > { %v1033_v33 = vmul.f32 %v2426_v23, %v1032_v28  ;;  %v2458_v44 = vmax.f32 %v966_v22, 1e-24  ;;  %v1050_v58 = vsel %vm2453_vm10, %v2398_v55, %v1046_v32  ;;  %v1030_v6 = vsel %vm2469_vm12, %v2404_v63, %v1026_v34 }
 0x319   : > { %v1054_v35 = vmul.f32 0.5, %v1053_v30  ;;  %v1013_v36 = vmul.f32 %v1935_v26, %v1012_v31  ;;  %vm1018_vm14 = vweird.f32 %v1935_v26  ;;  %v1010_v12 = vsel %vm2484_vm13, %v2409_v2, %v1006_v39 }
 0x31a   : > { %v1034_v40 = vmul.f32 0.5, %v1033_v33  ;;  %1940 = vrsqrt.f32 %v2458_v44  ;;  %v1165_v13 = vmul.f32 %v1050_v58, %v2312_v38  ;;  %v1163_v17 = vmul.f32 %v1030_v6, %v2326_v61  ;;  %vm1019_vm1 = vmor %vm1017_vm8, %vm1018_vm14 }
 0x31b   : > { %v1055_v42 = vsub.f32 1.5, %v1054_v35  ;;  %v1014_v43 = vmul.f32 0.5, %v1013_v36  ;;  %v976_v51 = vpop.xlane.xlu2 %975  ;;  %v974_v53 = vpop.xlane.xlu1 %973  ;;  %v1161_v38 = vmul.f32 %v1010_v12, %v2310_v37  ;;  %vm1077_vm2 = vweird.f32 %v2435_v29 }
 0x31c   : > { %v2460_v54 = vpop.eup %1936  ;;  %v1035_v0 = vsub.f32 1.5, %v1034_v40  ;;  %v2473_v3 = vmax.f32 %v976_v51, 1e-24  ;;  %v2475_v4 = vmax.f32 %v974_v53, 1e-24  ;;  %v972_v5 = vpop.xlane.xlu0 %971  ;;  %vm1067_vm3 = vweird.f32 %v2458_v44 }
 0x31d   : > { %v1056_v55 = vmul.f32 %v2421_v19, %v1055_v42  ;;  %v1015_v11 = vsub.f32 1.5, %v1014_v43  ;;  %v1082_v52 = vmul.f32 %v2460_v54, %v2424_v21  ;;  %v2507_v56 = vpop.eup %1938  ;;  %vm1087_vm4 = vweird.f32 %v2424_v21 }
 0x31e   : > { %v1036_v63 = vmul.f32 %v2426_v23, %v1035_v0  ;;  %1942 = vrsqrt.f32 %v2473_v3  ;;  %v1072_v22 = vmul.f32 %v2507_v56, %v2435_v29  ;;  %vm1088_vm5 = vweird.f32 %v2460_v54 }
 0x31f   : > { %v1060_v14 = vsel %vm1059_vm15, %v2421_v19, %v1056_v55  ;;  %v1016_v2 = vmul.f32 %v1935_v26, %v1015_v11  ;;  %1944 = vrsqrt.f32 %v2475_v4  ;;  %vm1078_vm6 = vweird.f32 %v2507_v56 }
 0x320   : > { %v1166_v18 = vmul.f32 %v1060_v14, %v2320_v50  ;;  %v1040_v20 = vsel %vm1039_vm0, %v2426_v23, %v1036_v63  ;;  %v1083_v50 = vmul.f32 %v2460_v54, %v1082_v52  ;;  %v2522_v23 = vmax.f32 %v972_v5, 1e-24  ;;  %v2525_v28 = vpop.eup %1940  ;;  %vm2554_vm9 = vmor %vm1077_vm2, %vm1078_vm6 }
 0x321   : > { %v1164_v57 = vmul.f32 %v1040_v20, %v2334_v9  ;;  %v1020_v19 = vsel %vm1019_vm1, %v1935_v26, %v1016_v2  ;;  %v1073_v1 = vmul.f32 %v2507_v56, %v1072_v22  ;;  %v1062_v31 = vmul.f32 %v2525_v28, %v2458_v44  ;;  %vm2596_vm1 = vmor %vm1087_vm4, %vm1088_vm5 }
 0x322   : > { %v1709_v24 = vpack.c.bf16 %v1166_v18, %v1165_v13  ;;  %v1162_v61 = vmul.f32 %v1020_v19, %v2318_v49  ;;  %1946 = vrsqrt.f32 %v2522_v23  ;;  %v1084_v34 = vmul.f32 0.5, %v1083_v50 }
 0x323   : > { %v1704_v25 = vpack.c.bf16 %v1164_v57, %v1163_v17  ;;  %v982_v27 = vpop.xlane.xlu2 %981  ;;  %v1074_v49 = vmul.f32 0.5, %v1073_v1  ;;  %v980_v32 = vpop.xlane.xlu1 %979  ;;  %v1063_v39 = vmul.f32 %v2525_v28, %v1062_v31  ;;  %vm1117_vm7 = vweird.f32 %v2473_v3 }
 0x324   : > { %1758 = vst [vmem:[#allocation9 + $0x10] sm:$0xff] %v1709_v24   ;;  %v1699_v37 = vpack.c.bf16 %v1162_v61, %v1161_v38  ;;  %v2528_v9 = vmax.f32 %v982_v27, 1e-24  ;;  %v978_v26 = vpop.xlane.xlu0 %977  ;;  %v1943_v30 = vpop.eup %1942  ;;  %vm1107_vm8 = vweird.f32 %v2475_v4  ;;  %v2546_v42 = vmax.f32 %v980_v32, 1e-24 }
 0x325   : > { %1757 = vst [vmem:[#allocation9 + $0x8] sm:$0xff] %v1704_v25   ;;  %v2533_v33 = vpop.eup %1944  ;;  %v1112_v35 = vmul.f32 %v1943_v30, %v2473_v3  ;;  %v1075_v36 = vsub.f32 1.5, %v1074_v49  ;;  %v1064_v51 = vmul.f32 0.5, %v1063_v39  ;;  %v2550_v58 = vmax.f32 %v978_v26, 1e-24 }
 0x326   : > { %1700 = vst [vmem:[#allocation9] sm:$0xff] %v1699_v37   ;;  %1948 = vrsqrt.f32 %v2528_v9  ;;  %v1102_v40 = vmul.f32 %v2533_v33, %v2475_v4  ;;  %v1085_v0 = vsub.f32 1.5, %v1084_v34  ;;  %vm1068_vm10 = vweird.f32 %v2525_v28 }
 0x327   : > { %v1113_v41 = vmul.f32 %v1943_v30, %v1112_v35  ;;  %v1076_v43 = vmul.f32 %v2507_v56, %v1075_v36  ;;  %1950 = vrsqrt.f32 %v2546_v42  ;;  %v1065_v55 = vsub.f32 1.5, %v1064_v51  ;;  %vm1069_vm13 = vmor %vm1067_vm3, %vm1068_vm10 }
 0x328   : > { %v1103_v53 = vmul.f32 %v2533_v33, %v1102_v40  ;;  %v1947_v45 = vpop.eup %1946  ;;  %vm1118_vm11 = vweird.f32 %v1943_v30  ;;  %vm1108_vm12 = vweird.f32 %v2533_v33  ;;  %1952 = vrsqrt.f32 %v2550_v58 }
 0x329   : > { %v1114_v6 = vmul.f32 0.5, %v1113_v41  ;;  %v1080_v46 = vsel %vm2554_vm9, %v2507_v56, %v1076_v43  ;;  %v1092_v12 = vmul.f32 %v1947_v45, %v2522_v23  ;;  %v1066_v13 = vmul.f32 %v2525_v28, %v1065_v55  ;;  %vm1119_vm14 = vmor %vm1117_vm7, %vm1118_vm11 }
 0x32a   : > { %v1104_v11 = vmul.f32 0.5, %v1103_v53  ;;  %v1086_v17 = vmul.f32 %v2460_v54, %v1085_v0  ;;  %v1168_v18 = vmul.f32 %v1080_v46, %v2336_v10  ;;  %vm1109_vm15 = vmor %vm1107_vm8, %vm1108_vm12  ;;  %vm1098_vm0 = vweird.f32 %v1947_v45 }
 0x32b   : > { %v1115_v29 = vsub.f32 1.5, %v1114_v6  ;;  %v1093_v2 = vmul.f32 %v1947_v45, %v1092_v12  ;;  %v1070_v57 = vsel %vm1069_vm13, %v2525_v28, %v1066_v13  ;;  %vm1097_vm2 = vweird.f32 %v2522_v23 }
 0x32c   : > { %v2564_v63 = vpop.eup %1948  ;;  %v984_v52 = vpop.xlane.xlu0 %983  ;;  %v1105_v14 = vsub.f32 1.5, %v1104_v11  ;;  %v1167_v10 = vmul.f32 %v1070_v57, %v2328_v62  ;;  %v1090_v28 = vsel %vm2596_vm1, %v2460_v54, %v1086_v17  ;;  %vm1099_vm3 = vmor %vm1097_vm2, %vm1098_vm0  ;;  %vm1137_vm4 = vweird.f32 %v2546_v42 }
 0x32d   : > { %v1142_v56 = vmul.f32 %v2564_v63, %v2528_v9  ;;  %v1116_v20 = vmul.f32 %v1943_v30, %v1115_v29  ;;  %v2577_v38 = vmax.f32 %v984_v52, 1e-24  ;;  %v1094_v22 = vmul.f32 0.5, %v1093_v2  ;;  %v1951_v61 = vpop.eup %1950 }
 0x32e   : > { %v1106_v19 = vmul.f32 %v2533_v33, %v1105_v14  ;;  %v1953_v1 = vpop.eup %1952  ;;  %v1714_v27 = vpack.c.bf16 %v1168_v18, %v1167_v10  ;;  %vm1138_vm5 = vweird.f32 %v1951_v61  ;;  %vm1147_vm7 = vweird.f32 %v2528_v9 }
 0x32f   : > { %v1143_v24 = vmul.f32 %v2564_v63, %v1142_v56  ;;  %v1120_v50 = vsel %vm1119_vm14, %v1943_v30, %v1116_v20  ;;  %1954 = vrsqrt.f32 %v2577_v38  ;;  %v1095_v25 = vsub.f32 1.5, %v1094_v22  ;;  %vm1139_vm9 = vmor %vm1137_vm4, %vm1138_vm5 }
 0x330   : > { %v1172_v44 = vmul.f32 %v1120_v50, %v2338_v15  ;;  %v1110_v3 = vsel %vm1109_vm15, %v2533_v33, %v1106_v19  ;;  %v1132_v15 = vmul.f32 %v1951_v61, %v2546_v42  ;;  %v1122_v30 = vmul.f32 %v1953_v1, %v2550_v58  ;;  %1759 = vst [vmem:[#allocation9 + $0x18] sm:$0xff] %v1714_v27  }
 0x331   : > { %v1171_v4 = vmul.f32 %v1110_v3, %v2330_v7  ;;  %v1096_v37 = vmul.f32 %v1947_v45, %v1095_v25  ;;  %v1144_v26 = vmul.f32 0.5, %v1143_v24  ;;  %v1169_v7 = vmul.f32 %v1090_v28, %v2314_v47 }
 0x332   : > { %v1133_v49 = vmul.f32 %v1951_v61, %v1132_v15  ;;  %v1123_v32 = vmul.f32 %v1953_v1, %v1122_v30  ;;  %vm1128_vm6 = vweird.f32 %v1953_v1  ;;  %vm1148_vm8 = vweird.f32 %v2564_v63 }
 0x333   : > { %v1724_v21 = vpack.c.bf16 %v1172_v44, %v1171_v4  ;;  %v1100_v31 = vsel %vm1099_vm3, %v1947_v45, %v1096_v37  ;;  %v1145_v35 = vsub.f32 1.5, %v1144_v26  ;;  %vm1127_vm10 = vweird.f32 %v2550_v58  ;;  %vm1149_vm13 = vmor %vm1147_vm7, %vm1148_vm8 }
 0x334   : > { %v1170_v23 = vmul.f32 %v1100_v31, %v2322_v59  ;;  %v1134_v34 = vmul.f32 0.5, %v1133_v49  ;;  %v1124_v36 = vmul.f32 0.5, %v1123_v32  ;;  %vm1129_vm11 = vmor %vm1127_vm10, %vm1128_vm6  ;;  %vm1157_vm14 = vweird.f32 %v2577_v38 }
 0x335   : > { %v1955_v33 = vpop.eup %1954  ;;  %1761 = vst [vmem:[#allocation9 + $0x28] sm:$0xff] %v1724_v21   ;;  %v1146_v59 = vmul.f32 %v2564_v63, %v1145_v35 }
 0x336   : > { %v1152_v54 = vmul.f32 %v1955_v33, %v2577_v38  ;;  %v1719_v39 = vpack.c.bf16 %v1170_v23, %v1169_v7  ;;  %v1135_v40 = vsub.f32 1.5, %v1134_v34  ;;  %v1125_v41 = vsub.f32 1.5, %v1124_v36 }
 0x337   : > { %vm1158_vm12 = vweird.f32 %v1955_v33  ;;  %v1150_v6 = vsel %vm1149_vm13, %v2564_v63, %v1146_v59 }
 0x338   : > { %v1153_v43 = vmul.f32 %v1955_v33, %v1152_v54  ;;  %1760 = vst [vmem:[#allocation9 + $0x20] sm:$0xff] %v1719_v39   ;;  %v1136_v47 = vmul.f32 %v1951_v61, %v1135_v40  ;;  %v1126_v51 = vmul.f32 %v1953_v1, %v1125_v41  ;;  %vm1159_vm15 = vmor %vm1157_vm14, %vm1158_vm12  ;;  %v1175_v58 = vmul.f32 %v1150_v6, %v2332_v8 }
 0x33a   : > { %v1154_v53 = vmul.f32 0.5, %v1153_v43  ;;  %v1140_v45 = vsel %vm1139_vm9, %v1951_v61, %v1136_v47  ;;  %v1130_v0 = vsel %vm1129_vm11, %v1953_v1, %v1126_v51 }
 0x33b   : > { %v1174_v42 = vmul.f32 %v1140_v45, %v2324_v60  ;;  %v1173_v9 = vmul.f32 %v1130_v0, %v2316_v48 }
 0x33c   : > { %v1155_v5 = vsub.f32 1.5, %v1154_v53 }
 0x33d   : > { %v1729_v55 = vpack.c.bf16 %v1174_v42, %v1173_v9 }
 0x33e   : > { %v1156_v46 = vmul.f32 %v1955_v33, %v1155_v5 }
 0x33f   : > { %1762 = vst [vmem:[#allocation9 + $0x30] sm:$0xff] %v1729_v55  }
 0x340   : > { %v1160_v11 = vsel %vm1159_vm15, %v1955_v33, %v1156_v46 }
 0x341   : > { %v1176_v12 = vmul.f32 %v1160_v11, %v2340_v16 }
 0x343   : > { %v1734_v60 = vpack.c.bf16 %v1176_v12, %v1175_v58 }
 0x345   : > { %1763 = vst [vmem:[#allocation9 + $0x38] sm:$0xff] %v1734_v60  }
 0x346 PF: > { %p1866_p6 = scmp.eq.s32.totalorder %s2199_s21, 1  ;;  %s1218_s28 = sshll.u32 %s2647_s4, 4  ;;  %s1219_s28 = int_to_ptr.hbm [resolvable:$true] %s1218_s28 }
 0x347   : > { %s2142_s29 = smov [#allocation9]   ;;  %s2143_s5 = smov 64  }
 0x348   : > { %s1216_s30 = sshll.u32 %s2142_s29, 4  ;;  %s2144_s8 = smov 4   ;;  %s1217_s30 = int_to_ptr.vmem [resolvable:$true] %s1216_s30 }
 0x349   : > { %1847 = dma.vmem_to_hbm [thread:$0]  (%p1866_p6), %s1217_s30, 1024, %s1219_s28, [#allocation5], %s2143_s5, %s2143_s5, %s2144_s8  }
 0x34a   : > { %2111 = dma.done.wait (%p1866_p6), [#allocation5], 1024  }
 0x34b   : > { %2113 = vsyncadd (%p1866_p6), [#allocation5], 4294966272 }
 0x34c PF: > { %s17_s20 = sadd.s32 1, %s2136_s20   ;;  %s2661_s15 = smov %s2120_s16 }
 0x34d   : > { %p14_p7 = scmp.ge.s32.totalorder %s17_s20, 4   ;;  %s2662_s16 = smov %s2124_s17 }
 0x34e   : > { %s2663_s17 = smov %s2249_s25  ;;  %s2664_s18 = smov %s2132_s19 }
 0x34f   : > { %s2665_s19 = smov %s2667_s10  ;;  %16 = sbr.rel (!%p14_p7) target bundleno = 5 (0x5), region = 106 }
 0x354   :  { %1235 = vsyncpa [#allocation4], 1 }
 0x355   :  { %1237 = vsyncpa [#allocation4 + $0x1], 1 }
 0x356   :  { %1238 = vsyncpa [#allocation7], 1 }
 0x357   :  { %1239 = vsyncpa [#allocation5], 1 }
 0x358   :  { %1241 = vsyncpa [#allocation5 + $0x1], 1 }

// kernel: _fused_stack.1
= control target key start
LH: loop header
LB: loop body
LE: loop exit
PB: predicated region body
PF: predicated region fallthrough
CT: control target
= control target key end

     0   :  { %9 = vsyncpa [#allocation4], 0  ;;  %s2643_s0 = inlined_call_operand.hbm [shape: bf16[128,128], index: 0, kind: input, shape index: {}]   ;;  %s2644_s1 = inlined_call_operand.hbm [shape: bf16[128,128], index: 1, kind: input, shape index: {}]   ;;  %s2645_s2 = inlined_call_operand.hbm [shape: bf16[2,128,128], index: 2, kind: input, shape index: {}]   ;;  %s2646_s3 = inlined_call_operand.vmem [shape: f32[2,1,128], index: 3, kind: input, shape index: {}]   ;;  %s2647_s4 = inlined_call_operand.hbm [shape: bf16[128,128], index: 4, kind: output, shape index: {}]  }
   0x1   :  { %10 = vsyncpa [#allocation7], 0 }
   0x2   :  { %11 = vsyncpa [#allocation5], 0  ;;  %s2170_s15 = smov 0   ;;  %s2172_s16 = smov 0  }
   0x3   :  { %s2174_s17 = smov 0   ;;  %s2176_s18 = smov 0  }
   0x4   :  { %s2178_s19 = smov 0   ;;  %s2180_s20 = smov 0  }
   0x5 LB: > { %s2199_s21 = sadd.s32 4294967295, %s2136_s20   ;;  %p91_p0 = scmp.ne.s32.totalorder %s2120_s16, %s2116_s15  ;;  %s2136_s20 = sphi %s2180_s20, %s17_s20   ;;  %s2132_s19 = sphi %s2178_s19, %s2665_s19   ;;  %s2128_s18 = sphi %s2176_s18, %s2664_s18   ;;  %s2124_s17 = sphi %s2174_s17, %s2663_s17   ;;  %s2120_s16 = sphi %s2172_s16, %s2662_s16   ;;  %s2116_s15 = sphi %s2170_s15, %s2661_s15  }
   0x6   : > { %p92_p1 = scmp.eq.s32.totalorder %s2199_s21, 0  ;;  %p1316_p2 = scmp.ge.s32.totalorder %s2136_s20, 1 }
   0x7   : > { %p149_p3 = scmp.lt.s32.totalorder %s2136_s20, 3  ;;  %s160_s25 = sshll.u32 %s2643_s0, 4  ;;  %s161_s25 = int_to_ptr.hbm [resolvable:$true] %s160_s25 }
   0x8   : > { %p2207_p4 = por %p92_p1, %p91_p0  ;;  %s2138_s27 = smov [#allocation3]  }
   0x9   : > { %p2214_p5 = pnand %p1316_p2, %p149_p3  ;;  %s162_s28 = sshll.u32 %s2138_s27, 4  ;;  %s163_s28 = int_to_ptr.vmem [resolvable:$true] %s162_s28 }
   0xa   : > { %s174_s5 = sshll.u32 %s2644_s1, 4  ;;  %s2139_s6 = smov 64   ;;  %s175_s5 = int_to_ptr.hbm [resolvable:$true] %s174_s5 }
   0xb   : > { %p1850_p6 = pneg %p2214_p5  ;;  %s2140_s7 = smov 4  }
   0xc   : > { %s2141_s8 = smov [#allocation6]   ;;  %s29_s10 = sadd.s32 1, %s2132_s19 }
   0xd   : > { %p1851_p7 = pnand %p1850_p6, %p92_p1  ;;  %s176_s9 = sshll.u32 %s2141_s8, 4  ;;  %s177_s9 = int_to_ptr.vmem [resolvable:$true] %s176_s9 }
   0xe   : > { %p31_p8 = scmp.ge.s32.totalorder %s29_s10, 2  ;;  %p85_p9 = scmp.ne.s32.totalorder %s2124_s17, %s2120_s16 }
   0xf   : > { %1853 = dma.hbm_to_vmem [thread:$0]  (!%p1851_p7), %s161_s25, 1024, %s163_s28, [#allocation4], %s2139_s6, %s2139_s6, %s2140_s7  }
  0x10   : > { %1856 = dma.hbm_to_vmem [thread:$0]  (!%p1851_p7), %s175_s5, 1024, %s177_s9, [#allocation7], %s2139_s6, %s2139_s6, %s2140_s7  }
  0x11   : > { %s78_s11 = sadd.s32 1, %s2124_s17  ;;  %p86_p10 = scmp.eq.s32.totalorder %s2136_s20, 0 }
  0x12   : > { %s2667_s10 = smov (%p31_p8, %s29_s10), 0  ;;  %p1863_p12 = scmp.lt.s32.totalorder %s2136_s20, 2 }
  0x13   : > { %p2238_p11 = por %p86_p10, %p85_p9  ;;  %s75_s13 = ssub.s32 %s2132_s19, %s2667_s10 }
  0x14   : > { %s190_s14 = sand.u32 1, %s2136_s20   ;;  %p76_p13 = scmp.eq.s32.totalorder %s75_s13, 0 }
  0x15   : > { %s192_s15 = sand.u32 1, %s2124_s17   ;;  %s1527_s24 = sshll.u32 %s2132_s19, 6 }
  0x16   : > { %s1320_s23 = sshll.u32 %s192_s15, 6  ;;  %s199_s29 = scalar_lea.hbm %s2645_s2, %s1527_s24 }
  0x17   : > { %s2249_s25 = scalar_select %p76_p13, %s2124_s17, %s78_s11  }
  0x18   : > { %s200_s30 = sshll.u32 %s199_s29, 4  ;;  %s194_s5 = scalar_lea.vmem [#allocation8], %s1320_s23  ;;  %s201_s30 = int_to_ptr.hbm [resolvable:$true] %s200_s30 }
  0x19   : > { %s202_s8 = sshll.u32 %s194_s5, 4  ;;  %p1858_p0 = pnand %p1863_p12, %p2238_p11  ;;  %s203_s8 = int_to_ptr.vmem [resolvable:$true] %s202_s8 }
  0x1a   : > { %s191_s9 = scalar_lea.sflag [#allocation4], %s190_s14  ;;  %220 = sbr.rel (%p2214_p5) target bundleno = 844 (0x34c), region = 36 }
  0x1b   : > { %1860 = dma.hbm_to_vmem [thread:$0]  (!%p1858_p0), %s201_s30, 1024, %s203_s8, %s191_s9, %s2139_s6, %s2139_s6, %s2140_s7  }
  0x1f   : > { %2099 = dma.done.wait (%p92_p1), [#allocation4], 1024  }
  0x20   : > { %2101 = vsyncadd (%p92_p1), [#allocation4], 4294966272 }
  0x21   : > { %2103 = dma.done.wait (%p92_p1), [#allocation7], 1024  }
  0x22   : > { %2105 = vsyncadd (%p92_p1), [#allocation7], 4294966272  ;;  %s232_s11 = sand.u32 1, %s2199_s21   ;;  %s234_s6 = sand.u32 1, %s2120_s16  }
  0x23   : > { %s1326_s7 = sshll.u32 %s234_s6, 6  ;;  %s233_s26 = scalar_lea.sflag [#allocation4], %s232_s11 }
  0x24   : > { %s2273_s12 = scalar_lea.vmem [#allocation8], %s1326_s7 }
  0x25   : > { %2107 = dma.done.wait (%p2207_p4), %s233_s26, 1024  }
  0x26   : > { %2109 = vsyncadd (%p2207_p4), %s233_s26, 4294966272  ;;  %p260_p2 = scmp.lt.s32.totalorder %s2128_s18, 1  ;;  %p1327_p1 = scmp.ne.s32.totalorder %s2128_s18, 0 }
  0x28   : > { %s2281_s13 = scalar_select %p260_p2, %s2128_s18, 1 }
  0x29   : > { %271 = sbr.rel (%p1327_p1) target bundleno = 239 (0xef), region = 56 }
  0x2a   : > { %s262_s23 = scalar_lea.vmem %s2646_s3, %s2281_s13 }
  0x2e   : > { %v1543_v0 = vld [vmem:[%s2273_s12 + $0x38] sm:$0xff]  ;;  %v1542_v1 = vld [vmem:[%s2273_s12 + $0x30] sm:$0xff]  ;;  %v1541_v2 = vld [vmem:[%s2273_s12 + $0x28] sm:$0xff] }
  0x2f   : > { %400 = vmatpush.bf16.msra.mxu0 %v1543_v0  ;;  %1764 = vmatpush.bf16.msra.mxu1 %v1543_v0  ;;  %v1540_v3 = vld [vmem:[%s2273_s12 + $0x20] sm:$0xff]  ;;  %v1539_v4 = vld [vmem:[%s2273_s12 + $0x18] sm:$0xff]  ;;  %v1538_v5 = vld [vmem:[%s2273_s12 + $0x10] sm:$0xff] }
  0x30   : > { %1765 = vmatpush.bf16.msra.mxu2 %v1543_v0  ;;  %1766 = vmatpush.bf16.msra.mxu3 %v1543_v0  ;;  %v1537_v6 = vld [vmem:[%s2273_s12 + $0x8] sm:$0xff]  ;;  %v1536_v7 = vld [vmem:[%s2273_s12] sm:$0xff]  ;;  %v1530_v9 = vld [vmem:[#allocation6 + $0x10] sm:$0xff] }
  0x31   : > { %v1528_v8 = vld [vmem:[#allocation6] sm:$0xff]  ;;  %v1534_v11 = vld [vmem:[#allocation6 + $0x30] sm:$0xff]  ;;  %v1529_v12 = vld [vmem:[#allocation6 + $0x8] sm:$0xff] }
  0x32   : > { %v1532_v10 = vld [vmem:[#allocation6 + $0x20] sm:$0xff]  ;;  %v1531_v13 = vld [vmem:[#allocation6 + $0x18] sm:$0xff]  ;;  %v1533_v14 = vld [vmem:[#allocation6 + $0x28] sm:$0xff] }
  0x33   : > { %401 = vmatpush.bf16.msra.mxu0 %v1542_v1  ;;  %1767 = vmatpush.bf16.msra.mxu1 %v1542_v1  ;;  %v1535_v15 = vld [vmem:[#allocation6 + $0x38] sm:$0xff] }
  0x34   : > { %1768 = vmatpush.bf16.msra.mxu2 %v1542_v1  ;;  %1769 = vmatpush.bf16.msra.mxu3 %v1542_v1 }
  0x37   : > { %402 = vmatpush.bf16.msra.mxu0 %v1541_v2  ;;  %1770 = vmatpush.bf16.msra.mxu1 %v1541_v2 }
  0x38   : > { %1771 = vmatpush.bf16.msra.mxu2 %v1541_v2  ;;  %1772 = vmatpush.bf16.msra.mxu3 %v1541_v2 }
  0x3b   : > { %403 = vmatpush.bf16.msra.mxu0 %v1540_v3  ;;  %1773 = vmatpush.bf16.msra.mxu1 %v1540_v3 }
  0x3c   : > { %1774 = vmatpush.bf16.msra.mxu2 %v1540_v3  ;;  %1775 = vmatpush.bf16.msra.mxu3 %v1540_v3 }
  0x3f   : > { %404 = vmatpush.bf16.msra.mxu0 %v1539_v4  ;;  %1776 = vmatpush.bf16.msra.mxu1 %v1539_v4 }
  0x40   : > { %1777 = vmatpush.bf16.msra.mxu2 %v1539_v4  ;;  %1778 = vmatpush.bf16.msra.mxu3 %v1539_v4 }
  0x43   : > { %405 = vmatpush.bf16.msra.mxu0 %v1538_v5  ;;  %1779 = vmatpush.bf16.msra.mxu1 %v1538_v5 }
  0x44   : > { %1780 = vmatpush.bf16.msra.mxu2 %v1538_v5  ;;  %1781 = vmatpush.bf16.msra.mxu3 %v1538_v5 }
  0x47   : > { %406 = vmatpush.bf16.msra.mxu0 %v1537_v6  ;;  %1782 = vmatpush.bf16.msra.mxu1 %v1537_v6 }
  0x48   : > { %1783 = vmatpush.bf16.msra.mxu2 %v1537_v6  ;;  %1784 = vmatpush.bf16.msra.mxu3 %v1537_v6 }
  0x4b   : > { %407 = vmatpush.bf16.msra.mxu0 %v1536_v7  ;;  %1785 = vmatpush.bf16.msra.mxu1 %v1536_v7 }
  0x4c   : > { %1786 = vmatpush.bf16.msra.mxu2 %v1536_v7  ;;  %1787 = vmatpush.bf16.msra.mxu3 %v1536_v7 }
  0x4e   : > { %408 = vmatmul.bf16.vlgmr.msra.gmra.mxu0 %v1528_v8  ;;  %418 = vmatmul.bf16.vlgmr.msra.gmra.mxu1 %v1530_v9 }
  0x4f   : > { %428 = vmatmul.bf16.vlgmr.msra.gmra.mxu2 %v1532_v10  ;;  %438 = vmatmul.bf16.vlgmr.msra.gmra.mxu3 %v1534_v11 }
  0x5e   : > { %413 = vmatmul.bf16.gmra.mxu0 %v1529_v12  ;;  %423 = vmatmul.bf16.gmra.mxu1 %v1531_v13 }
  0x5f   : > { %433 = vmatmul.bf16.gmra.mxu2 %v1533_v14  ;;  %443 = vmatmul.bf16.gmra.mxu3 %v1535_v15 }
  0xcb   : > { %v409_v16 = vpop.f32.mrf.mxu0  ;;  %v419_v17 = vpop.f32.mrf.mxu1 }
  0xd2   : > { %v429_v18 = vpop.f32.mrf.mxu2  ;;  %v439_v19 = vpop.f32.mrf.mxu3 }
  0xd3   : > { %v411_v20 = vpop.f32.mrf.mxu0  ;;  %v421_v21 = vpop.f32.mrf.mxu1 }
  0xd4   : > { %v1579_v22 = vpack.c.bf16 %v411_v20, %v409_v16  ;;  %v1589_v23 = vpack.c.bf16 %v421_v21, %v419_v17 }
  0xd6   : > { %1580 = vst [vmem:[#allocation2 + $0x30] sm:$0xff] %v1579_v22  }
  0xd7   : > { %1737 = vst [vmem:[#allocation2 + $0x18] sm:$0xff] %v1589_v23  }
  0xda   : > { %v431_v24 = vpop.f32.mrf.mxu2  ;;  %v441_v25 = vpop.f32.mrf.mxu3 }
  0xdb   : > { %v1599_v26 = vpack.c.bf16 %v431_v24, %v429_v18  ;;  %v1609_v27 = vpack.c.bf16 %v441_v25, %v439_v19  ;;  %v414_v28 = vpop.f32.mrf.mxu0  ;;  %v424_v29 = vpop.f32.mrf.mxu1 }
  0xdd   : > { %1739 = vst [vmem:[#allocation2 + $0x8] sm:$0xff] %v1599_v26  }
  0xde   : > { %1741 = vst [vmem:[#allocation2 + $0x28] sm:$0xff] %v1609_v27  }
  0xe2   : > { %v434_v30 = vpop.f32.mrf.mxu2  ;;  %v444_v31 = vpop.f32.mrf.mxu3 }
  0xe3   : > { %v416_v32 = vpop.f32.mrf.mxu0  ;;  %v426_v33 = vpop.f32.mrf.mxu1 }
  0xe4   : > { %v1584_v34 = vpack.c.bf16 %v416_v32, %v414_v28  ;;  %v1594_v35 = vpack.c.bf16 %v426_v33, %v424_v29 }
  0xe6   : > { %1736 = vst [vmem:[#allocation2] sm:$0xff] %v1584_v34  }
  0xe7   : > { %1738 = vst [vmem:[#allocation2 + $0x10] sm:$0xff] %v1594_v35  }
  0xea   : > { %v436_v36 = vpop.f32.mrf.mxu2  ;;  %v446_v37 = vpop.f32.mrf.mxu3 }
  0xeb   : > { %v1604_v38 = vpack.c.bf16 %v436_v36, %v434_v30  ;;  %v1614_v39 = vpack.c.bf16 %v446_v37, %v444_v31 }
  0xed   : > { %1740 = vst [vmem:[#allocation2 + $0x20] sm:$0xff] %v1604_v38  }
  0xee   : > { %1742 = vst [vmem:[#allocation2 + $0x38] sm:$0xff] %v1614_v39  }
  0xef PF: > { %p1392_p3 = scmp.le.s32.totalorder %s2128_s18, 0 }
  0xf1   : > { %484 = sbr.rel (%p1392_p3) target bundleno = 439 (0x1b7), region = 60 }
  0xf6   : > { %v1559_v40 = vld [vmem:[%s2273_s12 + $0x38] sm:$0xff]  ;;  %v1558_v41 = vld [vmem:[%s2273_s12 + $0x30] sm:$0xff]  ;;  %v1557_v42 = vld [vmem:[%s2273_s12 + $0x28] sm:$0xff] }
  0xf7   : > { %613 = vmatpush.bf16.msra.mxu0 %v1559_v40  ;;  %1788 = vmatpush.bf16.msra.mxu1 %v1559_v40  ;;  %v1556_v43 = vld [vmem:[%s2273_s12 + $0x20] sm:$0xff]  ;;  %v1555_v44 = vld [vmem:[%s2273_s12 + $0x18] sm:$0xff]  ;;  %v1554_v45 = vld [vmem:[%s2273_s12 + $0x10] sm:$0xff] }
  0xf8   : > { %1789 = vmatpush.bf16.msra.mxu2 %v1559_v40  ;;  %1790 = vmatpush.bf16.msra.mxu3 %v1559_v40  ;;  %v1553_v46 = vld [vmem:[%s2273_s12 + $0x8] sm:$0xff]  ;;  %v1552_v47 = vld [vmem:[%s2273_s12] sm:$0xff]  ;;  %v1546_v49 = vld [vmem:[#allocation9 + $0x10] sm:$0xff] }
  0xf9   : > { %v1544_v48 = vld [vmem:[#allocation9] sm:$0xff]  ;;  %v1550_v51 = vld [vmem:[#allocation9 + $0x30] sm:$0xff]  ;;  %v1545_v52 = vld [vmem:[#allocation9 + $0x8] sm:$0xff] }
  0xfa   : > { %v1548_v50 = vld [vmem:[#allocation9 + $0x20] sm:$0xff]  ;;  %v1547_v53 = vld [vmem:[#allocation9 + $0x18] sm:$0xff]  ;;  %v1549_v54 = vld [vmem:[#allocation9 + $0x28] sm:$0xff] }
  0xfb   : > { %614 = vmatpush.bf16.msra.mxu0 %v1558_v41  ;;  %1791 = vmatpush.bf16.msra.mxu1 %v1558_v41  ;;  %v1551_v55 = vld [vmem:[#allocation9 + $0x38] sm:$0xff] }
  0xfc   : > { %1792 = vmatpush.bf16.msra.mxu2 %v1558_v41  ;;  %1793 = vmatpush.bf16.msra.mxu3 %v1558_v41 }
  0xff   : > { %615 = vmatpush.bf16.msra.mxu0 %v1557_v42  ;;  %1794 = vmatpush.bf16.msra.mxu1 %v1557_v42 }
 0x100   : > { %1795 = vmatpush.bf16.msra.mxu2 %v1557_v42  ;;  %1796 = vmatpush.bf16.msra.mxu3 %v1557_v42 }
 0x103   : > { %616 = vmatpush.bf16.msra.mxu0 %v1556_v43  ;;  %1797 = vmatpush.bf16.msra.mxu1 %v1556_v43 }
 0x104   : > { %1798 = vmatpush.bf16.msra.mxu2 %v1556_v43  ;;  %1799 = vmatpush.bf16.msra.mxu3 %v1556_v43 }
 0x107   : > { %617 = vmatpush.bf16.msra.mxu0 %v1555_v44  ;;  %1800 = vmatpush.bf16.msra.mxu1 %v1555_v44 }
 0x108   : > { %1801 = vmatpush.bf16.msra.mxu2 %v1555_v44  ;;  %1802 = vmatpush.bf16.msra.mxu3 %v1555_v44 }
 0x10b   : > { %618 = vmatpush.bf16.msra.mxu0 %v1554_v45  ;;  %1803 = vmatpush.bf16.msra.mxu1 %v1554_v45 }
 0x10c   : > { %1804 = vmatpush.bf16.msra.mxu2 %v1554_v45  ;;  %1805 = vmatpush.bf16.msra.mxu3 %v1554_v45 }
 0x10f   : > { %619 = vmatpush.bf16.msra.mxu0 %v1553_v46  ;;  %1806 = vmatpush.bf16.msra.mxu1 %v1553_v46 }
 0x110   : > { %1807 = vmatpush.bf16.msra.mxu2 %v1553_v46  ;;  %1808 = vmatpush.bf16.msra.mxu3 %v1553_v46 }
 0x113   : > { %620 = vmatpush.bf16.msra.mxu0 %v1552_v47  ;;  %1809 = vmatpush.bf16.msra.mxu1 %v1552_v47 }
 0x114   : > { %1810 = vmatpush.bf16.msra.mxu2 %v1552_v47  ;;  %1811 = vmatpush.bf16.msra.mxu3 %v1552_v47 }
 0x116   : > { %621 = vmatmul.bf16.vlgmr.msra.gmra.mxu0 %v1544_v48  ;;  %631 = vmatmul.bf16.vlgmr.msra.gmra.mxu1 %v1546_v49 }
 0x117   : > { %641 = vmatmul.bf16.vlgmr.msra.gmra.mxu2 %v1548_v50  ;;  %651 = vmatmul.bf16.vlgmr.msra.gmra.mxu3 %v1550_v51 }
 0x126   : > { %626 = vmatmul.bf16.gmra.mxu0 %v1545_v52  ;;  %636 = vmatmul.bf16.gmra.mxu1 %v1547_v53 }
 0x127   : > { %646 = vmatmul.bf16.gmra.mxu2 %v1549_v54  ;;  %656 = vmatmul.bf16.gmra.mxu3 %v1551_v55 }
 0x193   : > { %v622_v56 = vpop.f32.mrf.mxu0  ;;  %v632_v57 = vpop.f32.mrf.mxu1 }
 0x19a   : > { %v642_v58 = vpop.f32.mrf.mxu2  ;;  %v652_v59 = vpop.f32.mrf.mxu3 }
 0x19b   : > { %v624_v60 = vpop.f32.mrf.mxu0  ;;  %v634_v61 = vpop.f32.mrf.mxu1 }
 0x19c   : > { %v1619_v62 = vpack.c.bf16 %v624_v60, %v622_v56  ;;  %v1629_v63 = vpack.c.bf16 %v634_v61, %v632_v57 }
 0x19e   : > { %1620 = vst [vmem:[#allocation2 + $0x30] sm:$0xff] %v1619_v62  }
 0x19f   : > { %1744 = vst [vmem:[#allocation2 + $0x18] sm:$0xff] %v1629_v63  }
 0x1a2   : > { %v644_v0 = vpop.f32.mrf.mxu2  ;;  %v654_v1 = vpop.f32.mrf.mxu3 }
 0x1a3   : > { %v1639_v2 = vpack.c.bf16 %v644_v0, %v642_v58  ;;  %v1649_v3 = vpack.c.bf16 %v654_v1, %v652_v59  ;;  %v627_v4 = vpop.f32.mrf.mxu0  ;;  %v637_v5 = vpop.f32.mrf.mxu1 }
 0x1a5   : > { %1746 = vst [vmem:[#allocation2 + $0x8] sm:$0xff] %v1639_v2  }
 0x1a6   : > { %1748 = vst [vmem:[#allocation2 + $0x28] sm:$0xff] %v1649_v3  }
 0x1aa   : > { %v647_v6 = vpop.f32.mrf.mxu2  ;;  %v657_v7 = vpop.f32.mrf.mxu3 }
 0x1ab   : > { %v629_v8 = vpop.f32.mrf.mxu0  ;;  %v639_v9 = vpop.f32.mrf.mxu1 }
 0x1ac   : > { %v1624_v10 = vpack.c.bf16 %v629_v8, %v627_v4  ;;  %v1634_v11 = vpack.c.bf16 %v639_v9, %v637_v5 }
 0x1ae   : > { %1743 = vst [vmem:[#allocation2] sm:$0xff] %v1624_v10  }
 0x1af   : > { %1745 = vst [vmem:[#allocation2 + $0x10] sm:$0xff] %v1634_v11  }
 0x1b2   : > { %v649_v12 = vpop.f32.mrf.mxu2  ;;  %v659_v13 = vpop.f32.mrf.mxu3 }
 0x1b3   : > { %v1644_v14 = vpack.c.bf16 %v649_v12, %v647_v6  ;;  %v1654_v15 = vpack.c.bf16 %v659_v13, %v657_v7 }
 0x1b5   : > { %1747 = vst [vmem:[#allocation2 + $0x20] sm:$0xff] %v1644_v14  }
 0x1b6   : > { %1749 = vst [vmem:[#allocation2 + $0x38] sm:$0xff] %v1654_v15  }
 0x1b7 PF: > { %v1574_v17 = vld [vmem:[#allocation2 + $0x28] sm:$0xff]  ;;  %v1571_v20 = vld [vmem:[#allocation2 + $0x10] sm:$0xff]  ;;  %v1570_v21 = vld [vmem:[#allocation2 + $0x18] sm:$0xff]  ;;  %p1521_p4 = scmp.ge.s32.totalorder %s2128_s18, 1 }
 0x1b8   : > { %v1572_v19 = vld [vmem:[#allocation2 + $0x8] sm:$0xff]  ;;  %v1569_v22 = vld [vmem:[#allocation2] sm:$0xff]  ;;  %v1568_v23 = vld [vmem:[#allocation2 + $0x30] sm:$0xff] }
 0x1b9   : > { %v1560_v24 = vld [vmem:[#allocation3] sm:$0xff]  ;;  %v1562_v25 = vld [vmem:[#allocation3 + $0x10] sm:$0xff]  ;;  %v1561_v28 = vld [vmem:[#allocation3 + $0x8] sm:$0xff] }
 0x1ba   : > { %v1564_v26 = vld [vmem:[#allocation3 + $0x20] sm:$0xff]  ;;  %v1566_v27 = vld [vmem:[#allocation3 + $0x30] sm:$0xff]  ;;  %v1563_v29 = vld [vmem:[#allocation3 + $0x18] sm:$0xff] }
 0x1bb   : > { %v1565_v30 = vld [vmem:[#allocation3 + $0x28] sm:$0xff]  ;;  %v1567_v31 = vld [vmem:[#allocation3 + $0x38] sm:$0xff]  ;;  %v1923_v32 = vld [vmem:[%s262_s23] ss:$0 sm:$0xff] }
 0x1bc   : > { %v1573_v18 = vld [vmem:[#allocation2 + $0x20] sm:$0xff] }
 0x1bd   : > { %v1575_v16 = vld [vmem:[#allocation2 + $0x38] sm:$0xff] }
 0x1be   : > { %830 = vmatpush.bf16.msra.mxu0 %v1575_v16  ;;  %1812 = vmatpush.bf16.msra.mxu1 %v1575_v16 }
 0x1bf   : > { %1813 = vmatpush.bf16.msra.mxu2 %v1575_v16  ;;  %1814 = vmatpush.bf16.msra.mxu3 %v1575_v16 }
 0x1c2   : > { %831 = vmatpush.bf16.msra.mxu0 %v1574_v17  ;;  %1815 = vmatpush.bf16.msra.mxu1 %v1574_v17 }
 0x1c3   : > { %1816 = vmatpush.bf16.msra.mxu2 %v1574_v17  ;;  %1817 = vmatpush.bf16.msra.mxu3 %v1574_v17 }
 0x1c6   : > { %832 = vmatpush.bf16.msra.mxu0 %v1573_v18  ;;  %1818 = vmatpush.bf16.msra.mxu1 %v1573_v18 }
 0x1c7   : > { %1819 = vmatpush.bf16.msra.mxu2 %v1573_v18  ;;  %1820 = vmatpush.bf16.msra.mxu3 %v1573_v18 }
 0x1ca   : > { %833 = vmatpush.bf16.msra.mxu0 %v1572_v19  ;;  %1821 = vmatpush.bf16.msra.mxu1 %v1572_v19 }
 0x1cb   : > { %1822 = vmatpush.bf16.msra.mxu2 %v1572_v19  ;;  %1823 = vmatpush.bf16.msra.mxu3 %v1572_v19 }
 0x1ce   : > { %834 = vmatpush.bf16.msra.mxu0 %v1571_v20  ;;  %1824 = vmatpush.bf16.msra.mxu1 %v1571_v20 }
 0x1cf   : > { %1825 = vmatpush.bf16.msra.mxu2 %v1571_v20  ;;  %1826 = vmatpush.bf16.msra.mxu3 %v1571_v20 }
 0x1d2   : > { %835 = vmatpush.bf16.msra.mxu0 %v1570_v21  ;;  %1827 = vmatpush.bf16.msra.mxu1 %v1570_v21 }
 0x1d3   : > { %1828 = vmatpush.bf16.msra.mxu2 %v1570_v21  ;;  %1829 = vmatpush.bf16.msra.mxu3 %v1570_v21 }
 0x1d6   : > { %836 = vmatpush.bf16.msra.mxu0 %v1569_v22  ;;  %1830 = vmatpush.bf16.msra.mxu1 %v1569_v22 }
 0x1d7   : > { %1831 = vmatpush.bf16.msra.mxu2 %v1569_v22  ;;  %1832 = vmatpush.bf16.msra.mxu3 %v1569_v22 }
 0x1da   : > { %837 = vmatpush.bf16.msra.mxu0 %v1568_v23  ;;  %1833 = vmatpush.bf16.msra.mxu1 %v1568_v23 }
 0x1db   : > { %1834 = vmatpush.bf16.msra.mxu2 %v1568_v23  ;;  %1835 = vmatpush.bf16.msra.mxu3 %v1568_v23 }
 0x1dd   : > { %838 = vmatmul.bf16.vlgmr.msra.gmra.mxu0 %v1560_v24  ;;  %848 = vmatmul.bf16.vlgmr.msra.gmra.mxu1 %v1562_v25 }
 0x1de   : > { %858 = vmatmul.bf16.vlgmr.msra.gmra.mxu2 %v1564_v26  ;;  %868 = vmatmul.bf16.vlgmr.msra.gmra.mxu3 %v1566_v27 }
 0x1ed   : > { %843 = vmatmul.bf16.gmra.mxu0 %v1561_v28  ;;  %853 = vmatmul.bf16.gmra.mxu1 %v1563_v29 }
 0x1ee   : > { %863 = vmatmul.bf16.gmra.mxu2 %v1565_v30  ;;  %873 = vmatmul.bf16.gmra.mxu3 %v1567_v31 }
 0x25a   : > { %v839_v33 = vpop.f32.mrf.mxu0  ;;  %v849_v34 = vpop.f32.mrf.mxu1 }
 0x25b   : > { %v840_v35 = vadd.f32 %v1923_v32, %v839_v33  ;;  %v850_v36 = vadd.f32 %v1923_v32, %v849_v34 }
 0x25d   : > { %v2310_v37 = vmax.f32 %v840_v35, 0.0  ;;  %v2312_v38 = vmax.f32 %v850_v36, 0.0 }
 0x261   : > { %v859_v39 = vpop.f32.mrf.mxu2  ;;  %v869_v40 = vpop.f32.mrf.mxu3 }
 0x262   : > { %v860_v41 = vadd.f32 %v1923_v32, %v859_v39  ;;  %v870_v42 = vadd.f32 %v1923_v32, %v869_v40  ;;  %v841_v43 = vpop.f32.mrf.mxu0  ;;  %v851_v44 = vpop.f32.mrf.mxu1 }
 0x263   : > { %v842_v45 = vadd.f32 %v1923_v32, %v841_v43  ;;  %v852_v46 = vadd.f32 %v1923_v32, %v851_v44 }
 0x264   : > { %v2314_v47 = vmax.f32 %v860_v41, 0.0  ;;  %v2316_v48 = vmax.f32 %v870_v42, 0.0 }
 0x265   : > { %v2318_v49 = vmax.f32 %v842_v45, 0.0  ;;  %v2320_v50 = vmax.f32 %v852_v46, 0.0 }
 0x269   : > { %v861_v51 = vpop.f32.mrf.mxu2  ;;  %v871_v52 = vpop.f32.mrf.mxu3 }
 0x26a   : > { %v862_v53 = vadd.f32 %v1923_v32, %v861_v51  ;;  %v872_v54 = vadd.f32 %v1923_v32, %v871_v52  ;;  %v844_v55 = vpop.f32.mrf.mxu0  ;;  %v854_v56 = vpop.f32.mrf.mxu1 }
 0x26b   : > { %v845_v57 = vadd.f32 %v1923_v32, %v844_v55  ;;  %v855_v58 = vadd.f32 %v1923_v32, %v854_v56 }
 0x26c   : > { %v2322_v59 = vmax.f32 %v862_v53, 0.0  ;;  %v2324_v60 = vmax.f32 %v872_v54, 0.0 }
 0x26d   : > { %v2326_v61 = vmax.f32 %v845_v57, 0.0  ;;  %v2328_v62 = vmax.f32 %v855_v58, 0.0 }
 0x271   : > { %v864_v63 = vpop.f32.mrf.mxu2  ;;  %v874_v0 = vpop.f32.mrf.mxu3 }
 0x272   : > { %v865_v1 = vadd.f32 %v1923_v32, %v864_v63  ;;  %v875_v2 = vadd.f32 %v1923_v32, %v874_v0  ;;  %v846_v3 = vpop.f32.mrf.mxu0  ;;  %v856_v4 = vpop.f32.mrf.mxu1 }
 0x273   : > { %v847_v5 = vadd.f32 %v1923_v32, %v846_v3  ;;  %v857_v6 = vadd.f32 %v1923_v32, %v856_v4 }
 0x274   : > { %v2330_v7 = vmax.f32 %v865_v1, 0.0  ;;  %v2332_v8 = vmax.f32 %v875_v2, 0.0 }
 0x275   : > { %v2334_v9 = vmax.f32 %v847_v5, 0.0  ;;  %v2336_v10 = vmax.f32 %v857_v6, 0.0 }
 0x278   : > { %898 = sbr.rel (%p1521_p4) target bundleno = 647 (0x287), region = 64 }
 0x279   : > { %v866_v11 = vpop.f32.mrf.mxu2  ;;  %v876_v12 = vpop.f32.mrf.mxu3 }
 0x27a   : > { %v867_v13 = vadd.f32 %v1923_v32, %v866_v11  ;;  %v877_v14 = vadd.f32 %v1923_v32, %v876_v12 }
 0x27c   : > { %v2338_v15 = vmax.f32 %v867_v13, 0.0  ;;  %v2340_v16 = vmax.f32 %v877_v14, 0.0 }
 0x27d   : > { %v1659_v17 = vpack.c.bf16 %v2318_v49, %v2310_v37  ;;  %v1664_v18 = vpack.c.bf16 %v2334_v9, %v2326_v61  ;;  %v1669_v19 = vpack.c.bf16 %v2320_v50, %v2312_v38  ;;  %v1674_v20 = vpack.c.bf16 %v2336_v10, %v2328_v62 }
 0x27e   : > { %v1679_v21 = vpack.c.bf16 %v2322_v59, %v2314_v47  ;;  %v1684_v22 = vpack.c.bf16 %v2338_v15, %v2330_v7  ;;  %v1689_v23 = vpack.c.bf16 %v2324_v60, %v2316_v48  ;;  %v1694_v24 = vpack.c.bf16 %v2340_v16, %v2332_v8 }
 0x27f   : > { %1660 = vst [vmem:[#allocation9] sm:$0xff] %v1659_v17  }
 0x280   : > { %1750 = vst [vmem:[#allocation9 + $0x8] sm:$0xff] %v1664_v18  }
 0x281   : > { %1751 = vst [vmem:[#allocation9 + $0x10] sm:$0xff] %v1669_v19  }
 0x282   : > { %1752 = vst [vmem:[#allocation9 + $0x18] sm:$0xff] %v1674_v20  }
 0x283   : > { %1753 = vst [vmem:[#allocation9 + $0x20] sm:$0xff] %v1679_v21  }
 0x284   : > { %1754 = vst [vmem:[#allocation9 + $0x28] sm:$0xff] %v1684_v22  }
 0x285   : > { %1755 = vst [vmem:[#allocation9 + $0x30] sm:$0xff] %v1689_v23  }
 0x286   : > { %1756 = vst [vmem:[#allocation9 + $0x38] sm:$0xff] %v1694_v24  }
 0x287 PF: > { %p1522_p5 = scmp.ne.s32.totalorder %s2128_s18, 1 }
 0x289   : > { %936 = sbr.rel (%p1522_p5) target bundleno = 838 (0x346), region = 68 }
 0x28e   : > { %v941_v25 = vmul.f32 %v2312_v38, %v2312_v38  ;;  %v939_v26 = vmul.f32 %v2326_v61, %v2326_v61  ;;  %v937_v27 = vmul.f32 %v2310_v37, %v2310_v37  ;;  %v942_v28 = vmul.f32 %v2320_v50, %v2320_v50 }
 0x28f   : > { %v940_v29 = vmul.f32 %v2334_v9, %v2334_v9  ;;  %v938_v30 = vmul.f32 %v2318_v49, %v2318_v49  ;;  %v945_v31 = vmul.f32 %v2314_v47, %v2314_v47  ;;  %v944_v32 = vmul.f32 %v2336_v10, %v2336_v10 }
 0x290   : > { %961 = vadd.xlane.f32.xlu2 %v941_v25  ;;  %957 = vadd.xlane.f32.xlu1 %v939_v26  ;;  %v943_v33 = vmul.f32 %v2328_v62, %v2328_v62  ;;  %v948_v34 = vmul.f32 %v2338_v15, %v2338_v15  ;;  %v947_v35 = vmul.f32 %v2330_v7, %v2330_v7 }
 0x291   : > { %953 = vadd.xlane.f32.xlu0 %v937_v27  ;;  %v946_v36 = vmul.f32 %v2322_v59, %v2322_v59  ;;  %v951_v39 = vmul.f32 %v2332_v8, %v2332_v8  ;;  %v950_v40 = vmul.f32 %v2324_v60, %v2324_v60  ;;  %v949_v41 = vmul.f32 %v2316_v48, %v2316_v48 }
 0x292   : > { %v952_v42 = vmul.f32 %v2340_v16, %v2340_v16 }
 0x298   : > { %963 = vadd.xlane.f32.xlu2 %v942_v28  ;;  %959 = vadd.xlane.f32.xlu1 %v940_v29 }
 0x299   : > { %955 = vadd.xlane.f32.xlu0 %v938_v30 }
 0x2a0   : > { %969 = vadd.xlane.f32.xlu2 %v945_v31  ;;  %967 = vadd.xlane.f32.xlu1 %v944_v32 }
 0x2a1   : > { %965 = vadd.xlane.f32.xlu0 %v943_v33 }
 0x2a8   : > { %975 = vadd.xlane.f32.xlu2 %v948_v34  ;;  %973 = vadd.xlane.f32.xlu1 %v947_v35 }
 0x2a9   : > { %971 = vadd.xlane.f32.xlu0 %v946_v36 }
 0x2b0   : > { %981 = vadd.xlane.f32.xlu2 %v951_v39  ;;  %979 = vadd.xlane.f32.xlu1 %v950_v40 }
 0x2b1   : > { %977 = vadd.xlane.f32.xlu0 %v949_v41 }
 0x2b9   : > { %983 = vadd.xlane.f32.xlu0 %v952_v42 }
 0x303   : > { %v962_v43 = vpop.xlane.xlu2 %961  ;;  %v958_v44 = vpop.xlane.xlu1 %957 }
 0x304   : > { %v989_v45 = vmax.f32 %v962_v43, 1e-24  ;;  %v2392_v46 = vmax.f32 %v958_v44, 1e-24  ;;  %v954_v51 = vpop.xlane.xlu0 %953 }
 0x305   : > { %v2394_v52 = vmax.f32 %v954_v51, 1e-24 }
 0x306   : > { %1924 = vrsqrt.f32 %v989_v45  ;;  %vm1047_vm0 = vweird.f32 %v989_v45  ;;  %vm1027_vm1 = vweird.f32 %v2392_v46 }
 0x307   : > { %1926 = vrsqrt.f32 %v2392_v46  ;;  %vm1007_vm3 = vweird.f32 %v2394_v52 }
 0x308   : > { %1928 = vrsqrt.f32 %v2394_v52 }
 0x30b   : > { %v964_v53 = vpop.xlane.xlu2 %963  ;;  %v960_v54 = vpop.xlane.xlu1 %959 }
 0x30c   : > { %v2398_v55 = vpop.eup %1924  ;;  %v2400_v56 = vmax.f32 %v964_v53, 1e-24  ;;  %v2402_v57 = vmax.f32 %v960_v54, 1e-24  ;;  %v956_v58 = vpop.xlane.xlu0 %955 }
 0x30d   : > { %v2404_v63 = vpop.eup %1926  ;;  %v1042_v0 = vmul.f32 %v2398_v55, %v989_v45  ;;  %v2407_v1 = vmax.f32 %v956_v58, 1e-24  ;;  %vm1048_vm2 = vweird.f32 %v2398_v55 }
 0x30e   : > { %v2409_v2 = vpop.eup %1928  ;;  %v1022_v3 = vmul.f32 %v2404_v63, %v2392_v46  ;;  %1930 = vrsqrt.f32 %v2400_v56  ;;  %vm1028_vm4 = vweird.f32 %v2404_v63  ;;  %vm1057_vm5 = vweird.f32 %v2400_v56  ;;  %vm2453_vm10 = vmor %vm1047_vm0, %vm1048_vm2 }
 0x30f   : > { %v1043_v4 = vmul.f32 %v2398_v55, %v1042_v0  ;;  %v1002_v5 = vmul.f32 %v2409_v2, %v2394_v52  ;;  %1932 = vrsqrt.f32 %v2402_v57  ;;  %vm1008_vm6 = vweird.f32 %v2409_v2  ;;  %vm2469_vm12 = vmor %vm1027_vm1, %vm1028_vm4 }
 0x310   : > { %v1023_v6 = vmul.f32 %v2404_v63, %v1022_v3  ;;  %1934 = vrsqrt.f32 %v2407_v1  ;;  %vm1037_vm7 = vweird.f32 %v2402_v57  ;;  %vm1017_vm8 = vweird.f32 %v2407_v1  ;;  %vm2484_vm13 = vmor %vm1007_vm3, %vm1008_vm6 }
 0x311   : > { %v1044_v11 = vmul.f32 0.5, %v1043_v4  ;;  %v1003_v12 = vmul.f32 %v2409_v2, %v1002_v5 }
 0x312   : > { %v1024_v13 = vmul.f32 0.5, %v1023_v6 }
 0x313   : > { %v1004_v14 = vmul.f32 0.5, %v1003_v12  ;;  %v970_v17 = vpop.xlane.xlu2 %969  ;;  %v968_v18 = vpop.xlane.xlu1 %967  ;;  %v1045_v20 = vsub.f32 1.5, %v1044_v11 }
 0x314   : > { %v2421_v19 = vpop.eup %1930  ;;  %v2424_v21 = vmax.f32 %v970_v17, 1e-24  ;;  %v966_v22 = vpop.xlane.xlu0 %965  ;;  %v1025_v24 = vsub.f32 1.5, %v1024_v13  ;;  %v2435_v29 = vmax.f32 %v968_v18, 1e-24 }
 0x315   : > { %v2426_v23 = vpop.eup %1932  ;;  %v1052_v25 = vmul.f32 %v2421_v19, %v2400_v56  ;;  %v1005_v27 = vsub.f32 1.5, %v1004_v14  ;;  %v1046_v32 = vmul.f32 %v2398_v55, %v1045_v20  ;;  %vm1058_vm9 = vweird.f32 %v2421_v19 }
 0x316   : > { %v1935_v26 = vpop.eup %1934  ;;  %v1032_v28 = vmul.f32 %v2426_v23, %v2402_v57  ;;  %1936 = vrsqrt.f32 %v2424_v21  ;;  %v1026_v34 = vmul.f32 %v2404_v63, %v1025_v24  ;;  %vm1038_vm11 = vweird.f32 %v2426_v23  ;;  %vm1059_vm15 = vmor %vm1057_vm5, %vm1058_vm9 }
 0x317   : > { %v1053_v30 = vmul.f32 %v2421_v19, %v1052_v25  ;;  %v1012_v31 = vmul.f32 %v1935_v26, %v2407_v1  ;;  %v1006_v39 = vmul.f32 %v2409_v2, %v1005_v27  ;;  %1938 = vrsqrt.f32 %v2435_v29  ;;  %vm1039_vm0 = vmor %vm1037_vm7, %vm1038_vm11 }
 0x318   : > { %v1033_v33 = vmul.f32 %v2426_v23, %v1032_v28  ;;  %v2458_v44 = vmax.f32 %v966_v22, 1e-24  ;;  %v1050_v58 = vsel %vm2453_vm10, %v2398_v55, %v1046_v32  ;;  %v1030_v6 = vsel %vm2469_vm12, %v2404_v63, %v1026_v34 }
 0x319   : > { %v1054_v35 = vmul.f32 0.5, %v1053_v30  ;;  %v1013_v36 = vmul.f32 %v1935_v26, %v1012_v31  ;;  %vm1018_vm14 = vweird.f32 %v1935_v26  ;;  %v1010_v12 = vsel %vm2484_vm13, %v2409_v2, %v1006_v39 }
 0x31a   : > { %v1034_v40 = vmul.f32 0.5, %v1033_v33  ;;  %1940 = vrsqrt.f32 %v2458_v44  ;;  %v1165_v13 = vmul.f32 %v1050_v58, %v2312_v38  ;;  %v1163_v17 = vmul.f32 %v1030_v6, %v2326_v61  ;;  %vm1019_vm1 = vmor %vm1017_vm8, %vm1018_vm14 }
 0x31b   : > { %v1055_v42 = vsub.f32 1.5, %v1054_v35  ;;  %v1014_v43 = vmul.f32 0.5, %v1013_v36  ;;  %v976_v51 = vpop.xlane.xlu2 %975  ;;  %v974_v53 = vpop.xlane.xlu1 %973  ;;  %v1161_v38 = vmul.f32 %v1010_v12, %v2310_v37  ;;  %vm1077_vm2 = vweird.f32 %v2435_v29 }
 0x31c   : > { %v2460_v54 = vpop.eup %1936  ;;  %v1035_v0 = vsub.f32 1.5, %v1034_v40  ;;  %v2473_v3 = vmax.f32 %v976_v51, 1e-24  ;;  %v2475_v4 = vmax.f32 %v974_v53, 1e-24  ;;  %v972_v5 = vpop.xlane.xlu0 %971  ;;  %vm1067_vm3 = vweird.f32 %v2458_v44 }
 0x31d   : > { %v1056_v55 = vmul.f32 %v2421_v19, %v1055_v42  ;;  %v1015_v11 = vsub.f32 1.5, %v1014_v43  ;;  %v1082_v52 = vmul.f32 %v2460_v54, %v2424_v21  ;;  %v2507_v56 = vpop.eup %1938  ;;  %vm1087_vm4 = vweird.f32 %v2424_v21 }
 0x31e   : > { %v1036_v63 = vmul.f32 %v2426_v23, %v1035_v0  ;;  %1942 = vrsqrt.f32 %v2473_v3  ;;  %v1072_v22 = vmul.f32 %v2507_v56, %v2435_v29  ;;  %vm1088_vm5 = vweird.f32 %v2460_v54 }
 0x31f   : > { %v1060_v14 = vsel %vm1059_vm15, %v2421_v19, %v1056_v55  ;;  %v1016_v2 = vmul.f32 %v1935_v26, %v1015_v11  ;;  %1944 = vrsqrt.f32 %v2475_v4  ;;  %vm1078_vm6 = vweird.f32 %v2507_v56 }
 0x320   : > { %v1166_v18 = vmul.f32 %v1060_v14, %v2320_v50  ;;  %v1040_v20 = vsel %vm1039_vm0, %v2426_v23, %v1036_v63  ;;  %v1083_v50 = vmul.f32 %v2460_v54, %v1082_v52  ;;  %v2522_v23 = vmax.f32 %v972_v5, 1e-24  ;;  %v2525_v28 = vpop.eup %1940  ;;  %vm2554_vm9 = vmor %vm1077_vm2, %vm1078_vm6 }
 0x321   : > { %v1164_v57 = vmul.f32 %v1040_v20, %v2334_v9  ;;  %v1020_v19 = vsel %vm1019_vm1, %v1935_v26, %v1016_v2  ;;  %v1073_v1 = vmul.f32 %v2507_v56, %v1072_v22  ;;  %v1062_v31 = vmul.f32 %v2525_v28, %v2458_v44  ;;  %vm2596_vm1 = vmor %vm1087_vm4, %vm1088_vm5 }
 0x322   : > { %v1709_v24 = vpack.c.bf16 %v1166_v18, %v1165_v13  ;;  %v1162_v61 = vmul.f32 %v1020_v19, %v2318_v49  ;;  %1946 = vrsqrt.f32 %v2522_v23  ;;  %v1084_v34 = vmul.f32 0.5, %v1083_v50 }
 0x323   : > { %v1704_v25 = vpack.c.bf16 %v1164_v57, %v1163_v17  ;;  %v982_v27 = vpop.xlane.xlu2 %981  ;;  %v1074_v49 = vmul.f32 0.5, %v1073_v1  ;;  %v980_v32 = vpop.xlane.xlu1 %979  ;;  %v1063_v39 = vmul.f32 %v2525_v28, %v1062_v31  ;;  %vm1117_vm7 = vweird.f32 %v2473_v3 }
 0x324   : > { %1758 = vst [vmem:[#allocation9 + $0x10] sm:$0xff] %v1709_v24   ;;  %v1699_v37 = vpack.c.bf16 %v1162_v61, %v1161_v38  ;;  %v2528_v9 = vmax.f32 %v982_v27, 1e-24  ;;  %v978_v26 = vpop.xlane.xlu0 %977  ;;  %v1943_v30 = vpop.eup %1942  ;;  %vm1107_vm8 = vweird.f32 %v2475_v4  ;;  %v2546_v42 = vmax.f32 %v980_v32, 1e-24 }
 0x325   : > { %1757 = vst [vmem:[#allocation9 + $0x8] sm:$0xff] %v1704_v25   ;;  %v2533_v33 = vpop.eup %1944  ;;  %v1112_v35 = vmul.f32 %v1943_v30, %v2473_v3  ;;  %v1075_v36 = vsub.f32 1.5, %v1074_v49  ;;  %v1064_v51 = vmul.f32 0.5, %v1063_v39  ;;  %v2550_v58 = vmax.f32 %v978_v26, 1e-24 }
 0x326   : > { %1700 = vst [vmem:[#allocation9] sm:$0xff] %v1699_v37   ;;  %1948 = vrsqrt.f32 %v2528_v9  ;;  %v1102_v40 = vmul.f32 %v2533_v33, %v2475_v4  ;;  %v1085_v0 = vsub.f32 1.5, %v1084_v34  ;;  %vm1068_vm10 = vweird.f32 %v2525_v28 }
 0x327   : > { %v1113_v41 = vmul.f32 %v1943_v30, %v1112_v35  ;;  %v1076_v43 = vmul.f32 %v2507_v56, %v1075_v36  ;;  %1950 = vrsqrt.f32 %v2546_v42  ;;  %v1065_v55 = vsub.f32 1.5, %v1064_v51  ;;  %vm1069_vm13 = vmor %vm1067_vm3, %vm1068_vm10 }
 0x328   : > { %v1103_v53 = vmul.f32 %v2533_v33, %v1102_v40  ;;  %v1947_v45 = vpop.eup %1946  ;;  %vm1118_vm11 = vweird.f32 %v1943_v30  ;;  %vm1108_vm12 = vweird.f32 %v2533_v33  ;;  %1952 = vrsqrt.f32 %v2550_v58 }
 0x329   : > { %v1114_v6 = vmul.f32 0.5, %v1113_v41  ;;  %v1080_v46 = vsel %vm2554_vm9, %v2507_v56, %v1076_v43  ;;  %v1092_v12 = vmul.f32 %v1947_v45, %v2522_v23  ;;  %v1066_v13 = vmul.f32 %v2525_v28, %v1065_v55  ;;  %vm1119_vm14 = vmor %vm1117_vm7, %vm1118_vm11 }
 0x32a   : > { %v1104_v11 = vmul.f32 0.5, %v1103_v53  ;;  %v1086_v17 = vmul.f32 %v2460_v54, %v1085_v0  ;;  %v1168_v18 = vmul.f32 %v1080_v46, %v2336_v10  ;;  %vm1109_vm15 = vmor %vm1107_vm8, %vm1108_vm12  ;;  %vm1098_vm0 = vweird.f32 %v1947_v45 }
 0x32b   : > { %v1115_v29 = vsub.f32 1.5, %v1114_v6  ;;  %v1093_v2 = vmul.f32 %v1947_v45, %v1092_v12  ;;  %v1070_v57 = vsel %vm1069_vm13, %v2525_v28, %v1066_v13  ;;  %vm1097_vm2 = vweird.f32 %v2522_v23 }
 0x32c   : > { %v2564_v63 = vpop.eup %1948  ;;  %v984_v52 = vpop.xlane.xlu0 %983  ;;  %v1105_v14 = vsub.f32 1.5, %v1104_v11  ;;  %v1167_v10 = vmul.f32 %v1070_v57, %v2328_v62  ;;  %v1090_v28 = vsel %vm2596_vm1, %v2460_v54, %v1086_v17  ;;  %vm1099_vm3 = vmor %vm1097_vm2, %vm1098_vm0  ;;  %vm1137_vm4 = vweird.f32 %v2546_v42 }
 0x32d   : > { %v1142_v56 = vmul.f32 %v2564_v63, %v2528_v9  ;;  %v1116_v20 = vmul.f32 %v1943_v30, %v1115_v29  ;;  %v2577_v38 = vmax.f32 %v984_v52, 1e-24  ;;  %v1094_v22 = vmul.f32 0.5, %v1093_v2  ;;  %v1951_v61 = vpop.eup %1950 }
 0x32e   : > { %v1106_v19 = vmul.f32 %v2533_v33, %v1105_v14  ;;  %v1953_v1 = vpop.eup %1952  ;;  %v1714_v27 = vpack.c.bf16 %v1168_v18, %v1167_v10  ;;  %vm1138_vm5 = vweird.f32 %v1951_v61  ;;  %vm1147_vm7 = vweird.f32 %v2528_v9 }
 0x32f   : > { %v1143_v24 = vmul.f32 %v2564_v63, %v1142_v56  ;;  %v1120_v50 = vsel %vm1119_vm14, %v1943_v30, %v1116_v20  ;;  %1954 = vrsqrt.f32 %v2577_v38  ;;  %v1095_v25 = vsub.f32 1.5, %v1094_v22  ;;  %vm1139_vm9 = vmor %vm1137_vm4, %vm1138_vm5 }
 0x330   : > { %v1172_v44 = vmul.f32 %v1120_v50, %v2338_v15  ;;  %v1110_v3 = vsel %vm1109_vm15, %v2533_v33, %v1106_v19  ;;  %v1132_v15 = vmul.f32 %v1951_v61, %v2546_v42  ;;  %v1122_v30 = vmul.f32 %v1953_v1, %v2550_v58  ;;  %1759 = vst [vmem:[#allocation9 + $0x18] sm:$0xff] %v1714_v27  }
 0x331   : > { %v1171_v4 = vmul.f32 %v1110_v3, %v2330_v7  ;;  %v1096_v37 = vmul.f32 %v1947_v45, %v1095_v25  ;;  %v1144_v26 = vmul.f32 0.5, %v1143_v24  ;;  %v1169_v7 = vmul.f32 %v1090_v28, %v2314_v47 }
 0x332   : > { %v1133_v49 = vmul.f32 %v1951_v61, %v1132_v15  ;;  %v1123_v32 = vmul.f32 %v1953_v1, %v1122_v30  ;;  %vm1128_vm6 = vweird.f32 %v1953_v1  ;;  %vm1148_vm8 = vweird.f32 %v2564_v63 }
 0x333   : > { %v1724_v21 = vpack.c.bf16 %v1172_v44, %v1171_v4  ;;  %v1100_v31 = vsel %vm1099_vm3, %v1947_v45, %v1096_v37  ;;  %v1145_v35 = vsub.f32 1.5, %v1144_v26  ;;  %vm1127_vm10 = vweird.f32 %v2550_v58  ;;  %vm1149_vm13 = vmor %vm1147_vm7, %vm1148_vm8 }
 0x334   : > { %v1170_v23 = vmul.f32 %v1100_v31, %v2322_v59  ;;  %v1134_v34 = vmul.f32 0.5, %v1133_v49  ;;  %v1124_v36 = vmul.f32 0.5, %v1123_v32  ;;  %vm1129_vm11 = vmor %vm1127_vm10, %vm1128_vm6  ;;  %vm1157_vm14 = vweird.f32 %v2577_v38 }
 0x335   : > { %v1955_v33 = vpop.eup %1954  ;;  %1761 = vst [vmem:[#allocation9 + $0x28] sm:$0xff] %v1724_v21   ;;  %v1146_v59 = vmul.f32 %v2564_v63, %v1145_v35 }
 0x336   : > { %v1152_v54 = vmul.f32 %v1955_v33, %v2577_v38  ;;  %v1719_v39 = vpack.c.bf16 %v1170_v23, %v1169_v7  ;;  %v1135_v40 = vsub.f32 1.5, %v1134_v34  ;;  %v1125_v41 = vsub.f32 1.5, %v1124_v36 }
 0x337   : > { %vm1158_vm12 = vweird.f32 %v1955_v33  ;;  %v1150_v6 = vsel %vm1149_vm13, %v2564_v63, %v1146_v59 }
 0x338   : > { %v1153_v43 = vmul.f32 %v1955_v33, %v1152_v54  ;;  %1760 = vst [vmem:[#allocation9 + $0x20] sm:$0xff] %v1719_v39   ;;  %v1136_v47 = vmul.f32 %v1951_v61, %v1135_v40  ;;  %v1126_v51 = vmul.f32 %v1953_v1, %v1125_v41  ;;  %vm1159_vm15 = vmor %vm1157_vm14, %vm1158_vm12  ;;  %v1175_v58 = vmul.f32 %v1150_v6, %v2332_v8 }
 0x33a   : > { %v1154_v53 = vmul.f32 0.5, %v1153_v43  ;;  %v1140_v45 = vsel %vm1139_vm9, %v1951_v61, %v1136_v47  ;;  %v1130_v0 = vsel %vm1129_vm11, %v1953_v1, %v1126_v51 }
 0x33b   : > { %v1174_v42 = vmul.f32 %v1140_v45, %v2324_v60  ;;  %v1173_v9 = vmul.f32 %v1130_v0, %v2316_v48 }
 0x33c   : > { %v1155_v5 = vsub.f32 1.5, %v1154_v53 }
 0x33d   : > { %v1729_v55 = vpack.c.bf16 %v1174_v42, %v1173_v9 }
 0x33e   : > { %v1156_v46 = vmul.f32 %v1955_v33, %v1155_v5 }
 0x33f   : > { %1762 = vst [vmem:[#allocation9 + $0x30] sm:$0xff] %v1729_v55  }
 0x340   : > { %v1160_v11 = vsel %vm1159_vm15, %v1955_v33, %v1156_v46 }
 0x341   : > { %v1176_v12 = vmul.f32 %v1160_v11, %v2340_v16 }
 0x343   : > { %v1734_v60 = vpack.c.bf16 %v1176_v12, %v1175_v58 }
 0x345   : > { %1763 = vst [vmem:[#allocation9 + $0x38] sm:$0xff] %v1734_v60  }
 0x346 PF: > { %p1866_p6 = scmp.eq.s32.totalorder %s2199_s21, 1  ;;  %s1218_s28 = sshll.u32 %s2647_s4, 4  ;;  %s1219_s28 = int_to_ptr.hbm [resolvable:$true] %s1218_s28 }
 0x347   : > { %s2142_s29 = smov [#allocation9]   ;;  %s2143_s5 = smov 64  }
 0x348   : > { %s1216_s30 = sshll.u32 %s2142_s29, 4  ;;  %s2144_s8 = smov 4   ;;  %s1217_s30 = int_to_ptr.vmem [resolvable:$true] %s1216_s30 }
 0x349   : > { %1847 = dma.vmem_to_hbm [thread:$0]  (%p1866_p6), %s1217_s30, 1024, %s1219_s28, [#allocation5], %s2143_s5, %s2143_s5, %s2144_s8  }
 0x34a   : > { %2111 = dma.done.wait (%p1866_p6), [#allocation5], 1024  }
 0x34b   : > { %2113 = vsyncadd (%p1866_p6), [#allocation5], 4294966272 }
 0x34c PF: > { %s17_s20 = sadd.s32 1, %s2136_s20   ;;  %s2661_s15 = smov %s2120_s16 }
 0x34d   : > { %p14_p7 = scmp.ge.s32.totalorder %s17_s20, 4   ;;  %s2662_s16 = smov %s2124_s17 }
 0x34e   : > { %s2663_s17 = smov %s2249_s25  ;;  %s2664_s18 = smov %s2132_s19 }
 0x34f   : > { %s2665_s19 = smov %s2667_s10  ;;  %16 = sbr.rel (!%p14_p7) target bundleno = 5 (0x5), region = 106 }
 0x354   :  { %1235 = vsyncpa [#allocation4], 1 }
 0x355   :  { %1237 = vsyncpa [#allocation4 + $0x1], 1 }
 0x356   :  { %1238 = vsyncpa [#allocation7], 1 }
 0x357   :  { %1239 = vsyncpa [#allocation5], 1 }
 0x358   :  { %1241 = vsyncpa [#allocation5 + $0x1], 1 }

</bundles_post_ra>
